<compile_context>
chip_gen: v7x
topology: tpu7x:2x2x1
jax: 0.10.0
libtpu: 0.0.40
codegen_flags: <defaults>
</compile_context>

<pallas_src>
import math
import functools

import jax
import jax.numpy as jnp
from jax.experimental import pallas as pl
from jax.experimental.pallas import tpu as pltpu


_EPS = 1e-5
_LANE = 128


def _round_up(x, m):
    return (x + m - 1) // m * m


@functools.lru_cache(maxsize=None)
def _vmem_limit():
    """Generation-aware scoped-VMEM budget: use most of v5e/v6e's 128 MiB, stay
    comfortably under v7x's 64 MiB (leave compiler headroom)."""
    try:
        cap = int(getattr(pltpu.get_tpu_info(), "vmem_capacity_bytes", 0)) or None
    except Exception:
        cap = None
    if cap is not None and cap >= 100 * 1024 * 1024:
        return 96 * 1024 * 1024          # v5e / v6e (128 MiB physical)
    return 48 * 1024 * 1024              # v7x (64 MiB physical) or unknown


# ---------------------------------------------------------------- pass 1: matmul + batch stats

def _matmul_stats_kernel(x_ref, w_ref, y_ref, s1_ref, s2_ref):
    # x: (tm, Cin), w: (Cin, Cout) -> y: (tm, Cout) pre-BN; per-tile stat partials
    # are written as two separate row stores (no sublane concat / relayout).
    y = jnp.dot(x_ref[...], w_ref[...], preferred_element_type=jnp.float32)
    y_ref[...] = y
    s1_ref[...] = jnp.sum(y, axis=0, keepdims=True)          # (1, Cout)  sum
    s2_ref[...] = jnp.sum(y * y, axis=0, keepdims=True)      # (1, Cout)  sum of squares


def linear_with_batch_stats(x2d, w, *, tile_m=1024):
    """y = x2d @ w (no bias: cancelled by gamma=1/beta=0 training-mode BN) plus the
    global per-channel BN scale/shift computed from full-batch statistics."""
    M, Cin = x2d.shape
    Cout = w.shape[1]
    tm = min(tile_m, _round_up(M, 8))
    Mp = _round_up(M, tm)
    if Mp != M:
        # Zero rows contribute nothing to sum / sum-of-squares (no bias), so the
        # statistics below (divided by the *real* M) stay exact.
        x2d = jnp.pad(x2d, ((0, Mp - M), (0, 0)))
    gm = Mp // tm

    y, s1, s2 = pl.pallas_call(
        _matmul_stats_kernel,
        out_shape=(jax.ShapeDtypeStruct((Mp, Cout), jnp.float32),
                   jax.ShapeDtypeStruct((gm, Cout), jnp.float32),
                   jax.ShapeDtypeStruct((gm, Cout), jnp.float32)),
        grid=(gm,),
        in_specs=[pl.BlockSpec((tm, Cin), lambda i: (i, 0)),
                  pl.BlockSpec((Cin, Cout), lambda i: (0, 0))],
        out_specs=(pl.BlockSpec((tm, Cout), lambda i: (i, 0)),
                   pl.BlockSpec((1, Cout), lambda i: (i, 0)),
                   pl.BlockSpec((1, Cout), lambda i: (i, 0))),
        compiler_params=pltpu.CompilerParams(
            dimension_semantics=("parallel",),
            vmem_limit_bytes=_vmem_limit()),
    )(x2d, w)

    # Combine tiny per-tile partials in XLA (keeps the M grid axis fully parallel).
    s1 = jnp.sum(s1, axis=0)
    s2 = jnp.sum(s2, axis=0)
    mean = s1 / M
    var = jnp.maximum(s2 / M - mean * mean, 0.0)     # biased variance (training BN)
    scale = jax.lax.rsqrt(var + _EPS)                # gamma = 1
    shift = -mean * scale                            # beta = 0
    return y, scale.reshape(1, Cout), shift.reshape(1, Cout)


# ---------------------------------------------------------------- pass 2: BN + ReLU (tiled)

def _bn_relu_kernel(y_ref, scale_ref, shift_ref, o_ref):
    o_ref[...] = jnp.maximum(y_ref[...] * scale_ref[...] + shift_ref[...], 0.0)


def bn_relu(y, scale, shift, *, tile_m=1024):
    Mp, Cout = y.shape
    tm = min(tile_m, Mp)
    assert Mp % tm == 0
    gm = Mp // tm
    return pl.pallas_call(
        _bn_relu_kernel,
        out_shape=jax.ShapeDtypeStruct((Mp, Cout), jnp.float32),
        grid=(gm,),
        in_specs=[pl.BlockSpec((tm, Cout), lambda i: (i, 0)),
                  pl.BlockSpec((1, Cout), lambda i: (0, 0)),
                  pl.BlockSpec((1, Cout), lambda i: (0, 0))],
        out_specs=pl.BlockSpec((tm, Cout), lambda i: (i, 0)),
        input_output_aliases={0: 0},    # y is dead after this -> reuse its HBM buffer
        compiler_params=pltpu.CompilerParams(
            dimension_semantics=("parallel",),
            vmem_limit_bytes=_vmem_limit()),
    )(y, scale, shift)


# ---------------------------------------------------------------- attention core (fused BN+ReLU)

def _attention_kernel(qkv_ref, scale_ref, shift_ref, o_ref, *, d, K, D, Dp):
    # qkv_ref: (N, Cp)  pre-BN q|k|v (+ zero lane padding) for one (b, t) slice.
    # scale/shift: (1, Cp)  global-batch BN affine; 1/sqrt(d) folded into q columns.
    # o_ref: (N, Dp)  lane-padded output block.
    N = qkv_ref.shape[0]
    # Fused BatchNorm (global batch stats, gamma=1/beta=0) + ReLU of q|k|v.
    qkv = jnp.maximum(qkv_ref[...] * scale_ref[...] + shift_ref[...], 0.0)   # (N, Cp)

    if Dp > D:
        # Zero the lane padding once; padded channels stay exact zeros downstream.
        o_ref[:, D:Dp] = jnp.zeros((N, Dp - D), jnp.float32)

    # d heads of width K == torch.split(., K, dim=-1).  Each head's context is
    # stored as soon as it finishes (no lane-axis concat, minimal live vregs).
    for h in range(d):
        lo = h * K
        qh = qkv[:, lo:lo + K]                           # (N, K)
        kh = qkv[:, D + lo:D + lo + K]                   # (N, K)
        vh = qkv[:, 2 * D + lo:2 * D + lo + K]           # (N, K)
        # scores: contract the K axis of q and k (no explicit transpose).
        s = jax.lax.dot_general(qh, kh, (((1,), (1,)), ((), ())),
                                preferred_element_type=jnp.float32)          # (N, N)
        s = s - jnp.max(s, axis=-1, keepdims=True)
        e = jnp.exp(s)
        inv = pl.reciprocal(jnp.sum(e, axis=-1, keepdims=True), approx=True)
        ctx = jnp.dot(e, vh, preferred_element_type=jnp.float32) * inv       # (N, K)
        o_ref[:, lo:lo + K] = ctx


def multihead_attention(qkv, scale, shift, *, d, K, D, Dp):
    # qkv: (B*T, N, Cp) -> out: (B*T, N, Dp).  Grid over the flattened (b, t) axis
    # ("parallel"): restores DMA/compute pipelining and keeps per-step VMEM tiny
    # (important for v7x's 64 MiB at realistic vertex counts).
    BT, N, Cp = qkv.shape
    return pl.pallas_call(
        functools.partial(_attention_kernel, d=d, K=K, D=D, Dp=Dp),
        out_shape=jax.ShapeDtypeStruct((BT, N, Dp), jnp.float32),
        grid=(BT,),
        # TODO(synk): sweep pipeline_mode=pl.Buffered(3) on the qkv spec if the
        # per-step compute stops hiding the DMA at realistic N.
        in_specs=[pl.BlockSpec((None, N, Cp), lambda i: (i, 0, 0)),
                  pl.BlockSpec((1, Cp), lambda i: (0, 0)),
                  pl.BlockSpec((1, Cp), lambda i: (0, 0))],
        out_specs=pl.BlockSpec((None, N, Dp), lambda i: (i, 0, 0)),
        compiler_params=pltpu.CompilerParams(
            dimension_semantics=("parallel",),
            vmem_limit_bytes=_vmem_limit()),
    )(qkv, scale, shift)


# ---------------------------------------------------------------- full module forward

def synorchou_graph_attention(X, SSE, params, K, d):
    B, T, N, D = X.shape
    assert D == K * d
    M = B * T * N
    Cp = _round_up(3 * D, _LANE)      # lane-padded q|k|v channel count (96 -> 128)
    Dp = _round_up(D, _LANE)          # lane-padded value / output channel count (32 -> 128)

    x2 = jnp.concatenate([X, SSE], axis=-1).reshape(M, 2 * D)               # (M, 2D)

    # Fused, lane-padded Q|K|V projection: one (M,2D)@(2D,Cp) matmul; padded
    # columns are zero weights -> exact-zero channels everywhere downstream.
    w_qkv = jnp.concatenate([params["wq"], params["wk"], params["wv"]], axis=1)
    w_qkv = jnp.pad(w_qkv, ((0, 0), (0, Cp - 3 * D)))
    y_qkv, scale_qkv, shift_qkv = linear_with_batch_stats(x2, w_qkv)

    # Fold 1/sqrt(d) into the q columns of the BN affine (positive scale commutes
    # with ReLU), deleting the per-score multiply inside the attention kernel.
    head_scale = jnp.concatenate([
        jnp.full((D,), 1.0 / math.sqrt(d), jnp.float32),
        jnp.ones((Cp - D,), jnp.float32)]).reshape(1, Cp)
    scale_qkv = scale_qkv * head_scale
    shift_qkv = shift_qkv * head_scale

    qkv = y_qkv[:M].reshape(B * T, N, Cp)
    o = multihead_attention(qkv, scale_qkv, shift_qkv, d=d, K=K, D=D, Dp=Dp)  # (BT, N, Dp)

    # Output projection (lane-padded) + BN + ReLU (two-pass BN, global batch stats).
    wo = jnp.pad(params["wo"], ((0, Dp - D), (0, Dp - D)))
    y_o, scale_o, shift_o = linear_with_batch_stats(o.reshape(M, Dp), wo)
    out = bn_relu(y_o, scale_o, shift_o)[:M, :D]                              # slice padding off
    return out.reshape(B, T, N, D)


# ---------------------------------------------------------------- deterministic param init

def init_params(key, D):
    Cin = 2 * D
    keys = jax.random.split(key, 4)

    def xavier(k, fan_in, fan_out):
        bound = math.sqrt(6.0 / (fan_in + fan_out))
        return jax.random.uniform(k, (fan_in, fan_out), jnp.float32, -bound, bound)

    # Conv biases are omitted on purpose: with training-mode BatchNorm (gamma=1,
    # beta=0) a per-channel constant bias is exactly removed by the mean subtraction,
    # so they have zero effect on the forward output.
    return {
        "wq": xavier(keys[0], Cin, D),
        "wk": xavier(keys[1], Cin, D),
        "wv": xavier(keys[2], Cin, D),
        "wo": xavier(keys[3], D, D),
    }


if __name__ == "__main__":
    K, d = 4, 8          # module naming: split width K, d heads; D = K*d
    D = K * d            # 32
    B, T, N = 2, 4, 8    # batch, num_step, num_vertex

    key = jax.random.PRNGKey(0)
    kx, ks, kp = jax.random.split(key, 3)
    X = jax.random.normal(kx, (B, T, N, D), dtype=jnp.float32)
    SSE = jax.random.normal(ks, (B, T, N, D), dtype=jnp.float32)
    params = init_params(kp, D)

    fwd = jax.jit(synorchou_graph_attention, static_argnums=(3, 4))
    out = fwd(X, SSE, params, K, d)
    jax.block_until_ready(out)
    assert out.shape == (B, T, N, D) and out.dtype == jnp.float32
    print("KERNEL_OK")
</pallas_src>

<mosaic_0001>
module attributes {stable_mosaic.version = 11 : i64} {
  func.func @_matmul_stats_kernel(%arg0: i32, %arg1: memref<64x64xf32, #tpu.memory_space<vmem>>, %arg2: memref<64x128xf32, #tpu.memory_space<vmem>>, %arg3: memref<64x128xf32, #tpu.memory_space<vmem>>, %arg4: memref<1x128xf32, #tpu.memory_space<vmem>>, %arg5: memref<1x128xf32, #tpu.memory_space<vmem>>) attributes {dimension_semantics = [#tpu.dimension_semantics<parallel>], iteration_bounds = array<i64: 1>, scalar_prefetch = 0 : i64, scratch_operands = 0 : i64, tpu.core_type = #tpu.core_type<tc>, window_params = [{transform_indices = @transform_0, window_bounds = array<i64: 64, 64>}, {pipeline_mode = #tpu.pipeline_mode<synchronous>, transform_indices = @transform_1, window_bounds = array<i64: 64, 128>}, {transform_indices = @transform_2, window_bounds = array<i64: 64, 128>}, {transform_indices = @transform_3, window_bounds = array<i64: 1, 128>}, {transform_indices = @transform_4, window_bounds = array<i64: 1, 128>}]} {
    %c0 = arith.constant 0 : index
    %c0_0 = arith.constant 0 : index
    %0 = vector.load %arg1[%c0, %c0_0] : memref<64x64xf32, #tpu.memory_space<vmem>>, vector<64x64xf32>
    %c0_1 = arith.constant 0 : index
    %c0_2 = arith.constant 0 : index
    %1 = vector.load %arg2[%c0_1, %c0_2] : memref<64x128xf32, #tpu.memory_space<vmem>>, vector<64x128xf32>
    %cst = arith.constant dense<0.000000e+00> : vector<64x128xf32>
    %2 = tpu.matmul %0, %1, %cst {dimension_numbers = #tpu.dot_dimension_numbers<[1], [0], [0], [1], [0, 0, 1, 1], [], []>} : vector<64x64xf32>, vector<64x128xf32>, vector<64x128xf32> -> vector<64x128xf32>
    %c0_3 = arith.constant 0 : index
    %c0_4 = arith.constant 0 : index
    %3 = vector.load %arg3[%c0_3, %c0_4] : memref<64x128xf32, #tpu.memory_space<vmem>>, vector<64x128xf32>
    tpu.vector_store %arg3[%c0_3, %c0_4], %2 {strides = array<i32>} : memref<64x128xf32, #tpu.memory_space<vmem>>, vector<64x128xf32>,
    %cst_5 = arith.constant dense<0.000000e+00> : vector<128xf32>
    %4 = vector.multi_reduction <add>, %2, %cst_5 [0] : vector<64x128xf32> to vector<128xf32>
    %5 = vector.shape_cast %4 : vector<128xf32> to vector<1x128xf32>
    %c0_6 = arith.constant 0 : index
    %c0_7 = arith.constant 0 : index
    %6 = vector.load %arg4[%c0_6, %c0_7] : memref<1x128xf32, #tpu.memory_space<vmem>>, vector<1x128xf32>
    tpu.vector_store %arg4[%c0_6, %c0_7], %5 {strides = array<i32>} : memref<1x128xf32, #tpu.memory_space<vmem>>, vector<1x128xf32>,
    %7 = arith.mulf %2, %2 : vector<64x128xf32>
    %cst_8 = arith.constant dense<0.000000e+00> : vector<128xf32>
    %8 = vector.multi_reduction <add>, %7, %cst_8 [0] : vector<64x128xf32> to vector<128xf32>
    %9 = vector.shape_cast %8 : vector<128xf32> to vector<1x128xf32>
    %c0_9 = arith.constant 0 : index
    %c0_10 = arith.constant 0 : index
    %10 = vector.load %arg5[%c0_9, %c0_10] : memref<1x128xf32, #tpu.memory_space<vmem>>, vector<1x128xf32>
    tpu.vector_store %arg5[%c0_9, %c0_10], %9 {strides = array<i32>} : memref<1x128xf32, #tpu.memory_space<vmem>>, vector<1x128xf32>,
    return
  }
  func.func @transform_0(%arg0: i32) -> (i32, i32) {
    %c0_i32 = arith.constant 0 : i32
    %c0_i32_0 = arith.constant 0 : i32
    return %arg0, %c0_i32 : i32, i32
  }
  func.func @transform_1(%arg0: i32) -> (i32, i32) {
    %c0_i32 = arith.constant 0 : i32
    %c0_i32_0 = arith.constant 0 : i32
    %c0_i32_1 = arith.constant 0 : i32
    return %c0_i32, %c0_i32_0 : i32, i32
  }
  func.func @transform_2(%arg0: i32) -> (i32, i32) {
    %c0_i32 = arith.constant 0 : i32
    %c0_i32_0 = arith.constant 0 : i32
    return %arg0, %c0_i32 : i32, i32
  }
  func.func @transform_3(%arg0: i32) -> (i32, i32) {
    %c0_i32 = arith.constant 0 : i32
    %c0_i32_0 = arith.constant 0 : i32
    return %arg0, %c0_i32 : i32, i32
  }
  func.func @transform_4(%arg0: i32) -> (i32, i32) {
    %c0_i32 = arith.constant 0 : i32
    %c0_i32_0 = arith.constant 0 : i32
    return %arg0, %c0_i32 : i32, i32
  }
}

module attributes {stable_mosaic.version = 11 : i64} {
  func.func @_matmul_stats_kernel(%arg0: i32, %arg1: memref<64x128xf32, #tpu.memory_space<vmem>>, %arg2: memref<128x128xf32, #tpu.memory_space<vmem>>, %arg3: memref<64x128xf32, #tpu.memory_space<vmem>>, %arg4: memref<1x128xf32, #tpu.memory_space<vmem>>, %arg5: memref<1x128xf32, #tpu.memory_space<vmem>>) attributes {dimension_semantics = [#tpu.dimension_semantics<parallel>], iteration_bounds = array<i64: 1>, scalar_prefetch = 0 : i64, scratch_operands = 0 : i64, tpu.core_type = #tpu.core_type<tc>, window_params = [{transform_indices = @transform_0, window_bounds = array<i64: 64, 128>}, {pipeline_mode = #tpu.pipeline_mode<synchronous>, transform_indices = @transform_1, window_bounds = array<i64: 128, 128>}, {transform_indices = @transform_2, window_bounds = array<i64: 64, 128>}, {transform_indices = @transform_3, window_bounds = array<i64: 1, 128>}, {transform_indices = @transform_4, window_bounds = array<i64: 1, 128>}]} {
    %c0 = arith.constant 0 : index
    %c0_0 = arith.constant 0 : index
    %0 = vector.load %arg1[%c0, %c0_0] : memref<64x128xf32, #tpu.memory_space<vmem>>, vector<64x128xf32>
    %c0_1 = arith.constant 0 : index
    %c0_2 = arith.constant 0 : index
    %1 = vector.load %arg2[%c0_1, %c0_2] : memref<128x128xf32, #tpu.memory_space<vmem>>, vector<128x128xf32>
    %cst = arith.constant dense<0.000000e+00> : vector<64x128xf32>
    %2 = tpu.matmul %0, %1, %cst {dimension_numbers = #tpu.dot_dimension_numbers<[1], [0], [0], [1], [0, 0, 1, 1], [], []>} : vector<64x128xf32>, vector<128x128xf32>, vector<64x128xf32> -> vector<64x128xf32>
    %c0_3 = arith.constant 0 : index
    %c0_4 = arith.constant 0 : index
    %3 = vector.load %arg3[%c0_3, %c0_4] : memref<64x128xf32, #tpu.memory_space<vmem>>, vector<64x128xf32>
    tpu.vector_store %arg3[%c0_3, %c0_4], %2 {strides = array<i32>} : memref<64x128xf32, #tpu.memory_space<vmem>>, vector<64x128xf32>,
    %cst_5 = arith.constant dense<0.000000e+00> : vector<128xf32>
    %4 = vector.multi_reduction <add>, %2, %cst_5 [0] : vector<64x128xf32> to vector<128xf32>
    %5 = vector.shape_cast %4 : vector<128xf32> to vector<1x128xf32>
    %c0_6 = arith.constant 0 : index
    %c0_7 = arith.constant 0 : index
    %6 = vector.load %arg4[%c0_6, %c0_7] : memref<1x128xf32, #tpu.memory_space<vmem>>, vector<1x128xf32>
    tpu.vector_store %arg4[%c0_6, %c0_7], %5 {strides = array<i32>} : memref<1x128xf32, #tpu.memory_space<vmem>>, vector<1x128xf32>,
    %7 = arith.mulf %2, %2 : vector<64x128xf32>
    %cst_8 = arith.constant dense<0.000000e+00> : vector<128xf32>
    %8 = vector.multi_reduction <add>, %7, %cst_8 [0] : vector<64x128xf32> to vector<128xf32>
    %9 = vector.shape_cast %8 : vector<128xf32> to vector<1x128xf32>
    %c0_9 = arith.constant 0 : index
    %c0_10 = arith.constant 0 : index
    %10 = vector.load %arg5[%c0_9, %c0_10] : memref<1x128xf32, #tpu.memory_space<vmem>>, vector<1x128xf32>
    tpu.vector_store %arg5[%c0_9, %c0_10], %9 {strides = array<i32>} : memref<1x128xf32, #tpu.memory_space<vmem>>, vector<1x128xf32>,
    return
  }
  func.func @transform_0(%arg0: i32) -> (i32, i32) {
    %c0_i32 = arith.constant 0 : i32
    %c0_i32_0 = arith.constant 0 : i32
    return %arg0, %c0_i32 : i32, i32
  }
  func.func @transform_1(%arg0: i32) -> (i32, i32) {
    %c0_i32 = arith.constant 0 : i32
    %c0_i32_0 = arith.constant 0 : i32
    %c0_i32_1 = arith.constant 0 : i32
    return %c0_i32, %c0_i32_0 : i32, i32
  }
  func.func @transform_2(%arg0: i32) -> (i32, i32) {
    %c0_i32 = arith.constant 0 : i32
    %c0_i32_0 = arith.constant 0 : i32
    return %arg0, %c0_i32 : i32, i32
  }
  func.func @transform_3(%arg0: i32) -> (i32, i32) {
    %c0_i32 = arith.constant 0 : i32
    %c0_i32_0 = arith.constant 0 : i32
    return %arg0, %c0_i32 : i32, i32
  }
  func.func @transform_4(%arg0: i32) -> (i32, i32) {
    %c0_i32 = arith.constant 0 : i32
    %c0_i32_0 = arith.constant 0 : i32
    return %arg0, %c0_i32 : i32, i32
  }
}

module attributes {stable_mosaic.version = 11 : i64} {
  func.func @_attention_kernel(%arg0: i32, %arg1: memref<1x8x128xf32, #tpu.memory_space<vmem>>, %arg2: memref<1x128xf32, #tpu.memory_space<vmem>>, %arg3: memref<1x128xf32, #tpu.memory_space<vmem>>, %arg4: memref<1x8x128xf32, #tpu.memory_space<vmem>>) attributes {dimension_semantics = [#tpu.dimension_semantics<parallel>], iteration_bounds = array<i64: 8>, scalar_prefetch = 0 : i64, scratch_operands = 0 : i64, tpu.core_type = #tpu.core_type<tc>, window_params = [{transform_indices = @transform_0, window_bounds = array<i64: 1, 8, 128>}, {pipeline_mode = #tpu.pipeline_mode<synchronous>, transform_indices = @transform_1, window_bounds = array<i64: 1, 128>}, {pipeline_mode = #tpu.pipeline_mode<synchronous>, transform_indices = @transform_2, window_bounds = array<i64: 1, 128>}, {transform_indices = @transform_3, window_bounds = array<i64: 1, 8, 128>}]} {
    %c0 = arith.constant 0 : index
    %c0_0 = arith.constant 0 : index
    %c0_1 = arith.constant 0 : index
    %0 = vector.load %arg1[%c0, %c0_0, %c0_1] : memref<1x8x128xf32, #tpu.memory_space<vmem>>, vector<1x8x128xf32>
    %1 = vector.shape_cast %0 : vector<1x8x128xf32> to vector<8x128xf32>
    %c0_2 = arith.constant 0 : index
    %c0_3 = arith.constant 0 : index
    %2 = vector.load %arg2[%c0_2, %c0_3] : memref<1x128xf32, #tpu.memory_space<vmem>>, vector<1x128xf32>
    %3 = vector.broadcast %2 : vector<1x128xf32> to vector<8x128xf32>
    %4 = arith.mulf %1, %3 : vector<8x128xf32>
    %c0_4 = arith.constant 0 : index
    %c0_5 = arith.constant 0 : index
    %5 = vector.load %arg3[%c0_4, %c0_5] : memref<1x128xf32, #tpu.memory_space<vmem>>, vector<1x128xf32>
    %6 = vector.broadcast %5 : vector<1x128xf32> to vector<8x128xf32>
    %7 = arith.addf %4, %6 : vector<8x128xf32>
    %cst = arith.constant 0.000000e+00 : f32
    %8 = vector.broadcast %cst : f32 to vector<8x128xf32>
    %9 = arith.maximumf %7, %8 : vector<8x128xf32>
    %cst_6 = arith.constant 0.000000e+00 : f32
    %10 = vector.broadcast %cst_6 : f32 to vector<8x96xf32>
    %c0_7 = arith.constant 0 : index
    %c0_8 = arith.constant 0 : index
    %c32 = arith.constant 32 : index
    %11 = vector.load %arg4[%c0_7, %c0_8, %c32] : memref<1x8x128xf32, #tpu.memory_space<vmem>>, vector<1x8x96xf32>
    %12 = vector.shape_cast %11 : vector<1x8x96xf32> to vector<8x96xf32>
    %13 = vector.shape_cast %10 : vector<8x96xf32> to vector<1x8x96xf32>
    tpu.vector_store %arg4[%c0_7, %c0_8, %c32], %13 {strides = array<i32>} : memref<1x8x128xf32, #tpu.memory_space<vmem>>, vector<1x8x96xf32>,
    %14 = vector.extract_strided_slice %9 {offsets = [0, 0], sizes = [8, 4], strides = [1, 1]} : vector<8x128xf32> to vector<8x4xf32>
    %15 = vector.extract_strided_slice %9 {offsets = [0, 32], sizes = [8, 4], strides = [1, 1]} : vector<8x128xf32> to vector<8x4xf32>
    %16 = vector.extract_strided_slice %9 {offsets = [0, 64], sizes = [8, 4], strides = [1, 1]} : vector<8x128xf32> to vector<8x4xf32>
    %cst_9 = arith.constant dense<0.000000e+00> : vector<8x8xf32>
    %17 = tpu.matmul %14, %15, %cst_9 {dimension_numbers = #tpu.dot_dimension_numbers<[1], [1], [0], [0], [0, 0, 1, 0], [], []>} : vector<8x4xf32>, vector<8x4xf32>, vector<8x8xf32> -> vector<8x8xf32>
    %cst_10 = arith.constant dense<0xFF800000> : vector<8xf32>
    %18 = vector.multi_reduction <maximumf>, %17, %cst_10 [1] : vector<8x8xf32> to vector<8xf32>
    %19 = vector.shape_cast %18 : vector<8xf32> to vector<8x1xf32>
    %20 = vector.broadcast %19 : vector<8x1xf32> to vector<8x8xf32>
    %21 = arith.subf %17, %20 : vector<8x8xf32>
    %22 = math.exp %21 : vector<8x8xf32>
    %cst_11 = arith.constant dense<0.000000e+00> : vector<8xf32>
    %23 = vector.multi_reduction <add>, %22, %cst_11 [1] : vector<8x8xf32> to vector<8xf32>
    %24 = vector.shape_cast %23 : vector<8xf32> to vector<8x1xf32>
    %25 = tpu.reciprocal %24 {approx = true} : vector<8x1xf32> -> vector<8x1xf32>
    %cst_12 = arith.constant dense<0.000000e+00> : vector<8x4xf32>
    %26 = tpu.matmul %22, %16, %cst_12 {dimension_numbers = #tpu.dot_dimension_numbers<[1], [0], [0], [1], [0, 0, 1, 1], [], []>} : vector<8x8xf32>, vector<8x4xf32>, vector<8x4xf32> -> vector<8x4xf32>
    %27 = vector.broadcast %25 : vector<8x1xf32> to vector<8x4xf32>
    %28 = arith.mulf %26, %27 : vector<8x4xf32>
    %c0_13 = arith.constant 0 : index
    %c0_14 = arith.constant 0 : index
    %c0_15 = arith.constant 0 : index
    %29 = vector.load %arg4[%c0_13, %c0_14, %c0_15] : memref<1x8x128xf32, #tpu.memory_space<vmem>>, vector<1x8x4xf32>
    %30 = vector.shape_cast %29 : vector<1x8x4xf32> to vector<8x4xf32>
    %31 = vector.shape_cast %28 : vector<8x4xf32> to vector<1x8x4xf32>
    tpu.vector_store %arg4[%c0_13, %c0_14, %c0_15], %31 {strides = array<i32>} : memref<1x8x128xf32, #tpu.memory_space<vmem>>, vector<1x8x4xf32>,
    %32 = vector.extract_strided_slice %9 {offsets = [0, 4], sizes = [8, 4], strides = [1, 1]} : vector<8x128xf32> to vector<8x4xf32>
    %33 = vector.extract_strided_slice %9 {offsets = [0, 36], sizes = [8, 4], strides = [1, 1]} : vector<8x128xf32> to vector<8x4xf32>
    %34 = vector.extract_strided_slice %9 {offsets = [0, 68], sizes = [8, 4], strides = [1, 1]} : vector<8x128xf32> to vector<8x4xf32>
    %cst_16 = arith.constant dense<0.000000e+00> : vector<8x8xf32>
    %35 = tpu.matmul %32, %33, %cst_16 {dimension_numbers = #tpu.dot_dimension_numbers<[1], [1], [0], [0], [0, 0, 1, 0], [], []>} : vector<8x4xf32>, vector<8x4xf32>, vector<8x8xf32> -> vector<8x8xf32>
    %cst_17 = arith.constant dense<0xFF800000> : vector<8xf32>
    %36 = vector.multi_reduction <maximumf>, %35, %cst_17 [1] : vector<8x8xf32> to vector<8xf32>
    %37 = vector.shape_cast %36 : vector<8xf32> to vector<8x1xf32>
    %38 = vector.broadcast %37 : vector<8x1xf32> to vector<8x8xf32>
    %39 = arith.subf %35, %38 : vector<8x8xf32>
    %40 = math.exp %39 : vector<8x8xf32>
    %cst_18 = arith.constant dense<0.000000e+00> : vector<8xf32>
    %41 = vector.multi_reduction <add>, %40, %cst_18 [1] : vector<8x8xf32> to vector<8xf32>
    %42 = vector.shape_cast %41 : vector<8xf32> to vector<8x1xf32>
    %43 = tpu.reciprocal %42 {approx = true} : vector<8x1xf32> -> vector<8x1xf32>
    %cst_19 = arith.constant dense<0.000000e+00> : vector<8x4xf32>
    %44 = tpu.matmul %40, %34, %cst_19 {dimension_numbers = #tpu.dot_dimension_numbers<[1], [0], [0], [1], [0, 0, 1, 1], [], []>} : vector<8x8xf32>, vector<8x4xf32>, vector<8x4xf32> -> vector<8x4xf32>
    %45 = vector.broadcast %43 : vector<8x1xf32> to vector<8x4xf32>
    %46 = arith.mulf %44, %45 : vector<8x4xf32>
    %c0_20 = arith.constant 0 : index
    %c0_21 = arith.constant 0 : index
    %c4 = arith.constant 4 : index
    %47 = vector.load %arg4[%c0_20, %c0_21, %c4] : memref<1x8x128xf32, #tpu.memory_space<vmem>>, vector<1x8x4xf32>
    %48 = vector.shape_cast %47 : vector<1x8x4xf32> to vector<8x4xf32>
    %49 = vector.shape_cast %46 : vector<8x4xf32> to vector<1x8x4xf32>
    tpu.vector_store %arg4[%c0_20, %c0_21, %c4], %49 {strides = array<i32>} : memref<1x8x128xf32, #tpu.memory_space<vmem>>, vector<1x8x4xf32>,
    %50 = vector.extract_strided_slice %9 {offsets = [0, 8], sizes = [8, 4], strides = [1, 1]} : vector<8x128xf32> to vector<8x4xf32>
    %51 = vector.extract_strided_slice %9 {offsets = [0, 40], sizes = [8, 4], strides = [1, 1]} : vector<8x128xf32> to vector<8x4xf32>
    %52 = vector.extract_strided_slice %9 {offsets = [0, 72], sizes = [8, 4], strides = [1, 1]} : vector<8x128xf32> to vector<8x4xf32>
    %cst_22 = arith.constant dense<0.000000e+00> : vector<8x8xf32>
    %53 = tpu.matmul %50, %51, %cst_22 {dimension_numbers = #tpu.dot_dimension_numbers<[1], [1], [0], [0], [0, 0, 1, 0], [], []>} : vector<8x4xf32>, vector<8x4xf32>, vector<8x8xf32> -> vector<8x8xf32>
    %cst_23 = arith.constant dense<0xFF800000> : vector<8xf32>
    %54 = vector.multi_reduction <maximumf>, %53, %cst_23 [1] : vector<8x8xf32> to vector<8xf32>
    %55 = vector.shape_cast %54 : vector<8xf32> to vector<8x1xf32>
    %56 = vector.broadcast %55 : vector<8x1xf32> to vector<8x8xf32>
    %57 = arith.subf %53, %56 : vector<8x8xf32>
    %58 = math.exp %57 : vector<8x8xf32>
    %cst_24 = arith.constant dense<0.000000e+00> : vector<8xf32>
    %59 = vector.multi_reduction <add>, %58, %cst_24 [1] : vector<8x8xf32> to vector<8xf32>
    %60 = vector.shape_cast %59 : vector<8xf32> to vector<8x1xf32>
    %61 = tpu.reciprocal %60 {approx = true} : vector<8x1xf32> -> vector<8x1xf32>
    %cst_25 = arith.constant dense<0.000000e+00> : vector<8x4xf32>
    %62 = tpu.matmul %58, %52, %cst_25 {dimension_numbers = #tpu.dot_dimension_numbers<[1], [0], [0], [1], [0, 0, 1, 1], [], []>} : vector<8x8xf32>, vector<8x4xf32>, vector<8x4xf32> -> vector<8x4xf32>
    %63 = vector.broadcast %61 : vector<8x1xf32> to vector<8x4xf32>
    %64 = arith.mulf %62, %63 : vector<8x4xf32>
    %c0_26 = arith.constant 0 : index
    %c0_27 = arith.constant 0 : index
    %c8 = arith.constant 8 : index
    %65 = vector.load %arg4[%c0_26, %c0_27, %c8] : memref<1x8x128xf32, #tpu.memory_space<vmem>>, vector<1x8x4xf32>
    %66 = vector.shape_cast %65 : vector<1x8x4xf32> to vector<8x4xf32>
    %67 = vector.shape_cast %64 : vector<8x4xf32> to vector<1x8x4xf32>
    tpu.vector_store %arg4[%c0_26, %c0_27, %c8], %67 {strides = array<i32>} : memref<1x8x128xf32, #tpu.memory_space<vmem>>, vector<1x8x4xf32>,
    %68 = vector.extract_strided_slice %9 {offsets = [0, 12], sizes = [8, 4], strides = [1, 1]} : vector<8x128xf32> to vector<8x4xf32>
    %69 = vector.extract_strided_slice %9 {offsets = [0, 44], sizes = [8, 4], strides = [1, 1]} : vector<8x128xf32> to vector<8x4xf32>
    %70 = vector.extract_strided_slice %9 {offsets = [0, 76], sizes = [8, 4], strides = [1, 1]} : vector<8x128xf32> to vector<8x4xf32>
    %cst_28 = arith.constant dense<0.000000e+00> : vector<8x8xf32>
    %71 = tpu.matmul %68, %69, %cst_28 {dimension_numbers = #tpu.dot_dimension_numbers<[1], [1], [0], [0], [0, 0, 1, 0], [], []>} : vector<8x4xf32>, vector<8x4xf32>, vector<8x8xf32> -> vector<8x8xf32>
    %cst_29 = arith.constant dense<0xFF800000> : vector<8xf32>
    %72 = vector.multi_reduction <maximumf>, %71, %cst_29 [1] : vector<8x8xf32> to vector<8xf32>
    %73 = vector.shape_cast %72 : vector<8xf32> to vector<8x1xf32>
    %74 = vector.broadcast %73 : vector<8x1xf32> to vector<8x8xf32>
    %75 = arith.subf %71, %74 : vector<8x8xf32>
    %76 = math.exp %75 : vector<8x8xf32>
    %cst_30 = arith.constant dense<0.000000e+00> : vector<8xf32>
    %77 = vector.multi_reduction <add>, %76, %cst_30 [1] : vector<8x8xf32> to vector<8xf32>
    %78 = vector.shape_cast %77 : vector<8xf32> to vector<8x1xf32>
    %79 = tpu.reciprocal %78 {approx = true} : vector<8x1xf32> -> vector<8x1xf32>
    %cst_31 = arith.constant dense<0.000000e+00> : vector<8x4xf32>
    %80 = tpu.matmul %76, %70, %cst_31 {dimension_numbers = #tpu.dot_dimension_numbers<[1], [0], [0], [1], [0, 0, 1, 1], [], []>} : vector<8x8xf32>, vector<8x4xf32>, vector<8x4xf32> -> vector<8x4xf32>
    %81 = vector.broadcast %79 : vector<8x1xf32> to vector<8x4xf32>
    %82 = arith.mulf %80, %81 : vector<8x4xf32>
    %c0_32 = arith.constant 0 : index
    %c0_33 = arith.constant 0 : index
    %c12 = arith.constant 12 : index
    %83 = vector.load %arg4[%c0_32, %c0_33, %c12] : memref<1x8x128xf32, #tpu.memory_space<vmem>>, vector<1x8x4xf32>
    %84 = vector.shape_cast %83 : vector<1x8x4xf32> to vector<8x4xf32>
    %85 = vector.shape_cast %82 : vector<8x4xf32> to vector<1x8x4xf32>
    tpu.vector_store %arg4[%c0_32, %c0_33, %c12], %85 {strides = array<i32>} : memref<1x8x128xf32, #tpu.memory_space<vmem>>, vector<1x8x4xf32>,
    %86 = vector.extract_strided_slice %9 {offsets = [0, 16], sizes = [8, 4], strides = [1, 1]} : vector<8x128xf32> to vector<8x4xf32>
    %87 = vector.extract_strided_slice %9 {offsets = [0, 48], sizes = [8, 4], strides = [1, 1]} : vector<8x128xf32> to vector<8x4xf32>
    %88 = vector.extract_strided_slice %9 {offsets = [0, 80], sizes = [8, 4], strides = [1, 1]} : vector<8x128xf32> to vector<8x4xf32>
    %cst_34 = arith.constant dense<0.000000e+00> : vector<8x8xf32>
    %89 = tpu.matmul %86, %87, %cst_34 {dimension_numbers = #tpu.dot_dimension_numbers<[1], [1], [0], [0], [0, 0, 1, 0], [], []>} : vector<8x4xf32>, vector<8x4xf32>, vector<8x8xf32> -> vector<8x8xf32>
    %cst_35 = arith.constant dense<0xFF800000> : vector<8xf32>
    %90 = vector.multi_reduction <maximumf>, %89, %cst_35 [1] : vector<8x8xf32> to vector<8xf32>
    %91 = vector.shape_cast %90 : vector<8xf32> to vector<8x1xf32>
    %92 = vector.broadcast %91 : vector<8x1xf32> to vector<8x8xf32>
    %93 = arith.subf %89, %92 : vector<8x8xf32>
    %94 = math.exp %93 : vector<8x8xf32>
    %cst_36 = arith.constant dense<0.000000e+00> : vector<8xf32>
    %95 = vector.multi_reduction <add>, %94, %cst_36 [1] : vector<8x8xf32> to vector<8xf32>
    %96 = vector.shape_cast %95 : vector<8xf32> to vector<8x1xf32>
    %97 = tpu.reciprocal %96 {approx = true} : vector<8x1xf32> -> vector<8x1xf32>
    %cst_37 = arith.constant dense<0.000000e+00> : vector<8x4xf32>
    %98 = tpu.matmul %94, %88, %cst_37 {dimension_numbers = #tpu.dot_dimension_numbers<[1], [0], [0], [1], [0, 0, 1, 1], [], []>} : vector<8x8xf32>, vector<8x4xf32>, vector<8x4xf32> -> vector<8x4xf32>
    %99 = vector.broadcast %97 : vector<8x1xf32> to vector<8x4xf32>
    %100 = arith.mulf %98, %99 : vector<8x4xf32>
    %c0_38 = arith.constant 0 : index
    %c0_39 = arith.constant 0 : index
    %c16 = arith.constant 16 : index
    %101 = vector.load %arg4[%c0_38, %c0_39, %c16] : memref<1x8x128xf32, #tpu.memory_space<vmem>>, vector<1x8x4xf32>
    %102 = vector.shape_cast %101 : vector<1x8x4xf32> to vector<8x4xf32>
    %103 = vector.shape_cast %100 : vector<8x4xf32> to vector<1x8x4xf32>
    tpu.vector_store %arg4[%c0_38, %c0_39, %c16], %103 {strides = array<i32>} : memref<1x8x128xf32, #tpu.memory_space<vmem>>, vector<1x8x4xf32>,
    %104 = vector.extract_strided_slice %9 {offsets = [0, 20], sizes = [8, 4], strides = [1, 1]} : vector<8x128xf32> to vector<8x4xf32>
    %105 = vector.extract_strided_slice %9 {offsets = [0, 52], sizes = [8, 4], strides = [1, 1]} : vector<8x128xf32> to vector<8x4xf32>
    %106 = vector.extract_strided_slice %9 {offsets = [0, 84], sizes = [8, 4], strides = [1, 1]} : vector<8x128xf32> to vector<8x4xf32>
    %cst_40 = arith.constant dense<0.000000e+00> : vector<8x8xf32>
    %107 = tpu.matmul %104, %105, %cst_40 {dimension_numbers = #tpu.dot_dimension_numbers<[1], [1], [0], [0], [0, 0, 1, 0], [], []>} : vector<8x4xf32>, vector<8x4xf32>, vector<8x8xf32> -> vector<8x8xf32>
    %cst_41 = arith.constant dense<0xFF800000> : vector<8xf32>
    %108 = vector.multi_reduction <maximumf>, %107, %cst_41 [1] : vector<8x8xf32> to vector<8xf32>
    %109 = vector.shape_cast %108 : vector<8xf32> to vector<8x1xf32>
    %110 = vector.broadcast %109 : vector<8x1xf32> to vector<8x8xf32>
    %111 = arith.subf %107, %110 : vector<8x8xf32>
    %112 = math.exp %111 : vector<8x8xf32>
    %cst_42 = arith.constant dense<0.000000e+00> : vector<8xf32>
    %113 = vector.multi_reduction <add>, %112, %cst_42 [1] : vector<8x8xf32> to vector<8xf32>
    %114 = vector.shape_cast %113 : vector<8xf32> to vector<8x1xf32>
    %115 = tpu.reciprocal %114 {approx = true} : vector<8x1xf32> -> vector<8x1xf32>
    %cst_43 = arith.constant dense<0.000000e+00> : vector<8x4xf32>
    %116 = tpu.matmul %112, %106, %cst_43 {dimension_numbers = #tpu.dot_dimension_numbers<[1], [0], [0], [1], [0, 0, 1, 1], [], []>} : vector<8x8xf32>, vector<8x4xf32>, vector<8x4xf32> -> vector<8x4xf32>
    %117 = vector.broadcast %115 : vector<8x1xf32> to vector<8x4xf32>
    %118 = arith.mulf %116, %117 : vector<8x4xf32>
    %c0_44 = arith.constant 0 : index
    %c0_45 = arith.constant 0 : index
    %c20 = arith.constant 20 : index
    %119 = vector.load %arg4[%c0_44, %c0_45, %c20] : memref<1x8x128xf32, #tpu.memory_space<vmem>>, vector<1x8x4xf32>
    %120 = vector.shape_cast %119 : vector<1x8x4xf32> to vector<8x4xf32>
    %121 = vector.shape_cast %118 : vector<8x4xf32> to vector<1x8x4xf32>
    tpu.vector_store %arg4[%c0_44, %c0_45, %c20], %121 {strides = array<i32>} : memref<1x8x128xf32, #tpu.memory_space<vmem>>, vector<1x8x4xf32>,
    %122 = vector.extract_strided_slice %9 {offsets = [0, 24], sizes = [8, 4], strides = [1, 1]} : vector<8x128xf32> to vector<8x4xf32>
    %123 = vector.extract_strided_slice %9 {offsets = [0, 56], sizes = [8, 4], strides = [1, 1]} : vector<8x128xf32> to vector<8x4xf32>
    %124 = vector.extract_strided_slice %9 {offsets = [0, 88], sizes = [8, 4], strides = [1, 1]} : vector<8x128xf32> to vector<8x4xf32>
    %cst_46 = arith.constant dense<0.000000e+00> : vector<8x8xf32>
    %125 = tpu.matmul %122, %123, %cst_46 {dimension_numbers = #tpu.dot_dimension_numbers<[1], [1], [0], [0], [0, 0, 1, 0], [], []>} : vector<8x4xf32>, vector<8x4xf32>, vector<8x8xf32> -> vector<8x8xf32>
    %cst_47 = arith.constant dense<0xFF800000> : vector<8xf32>
    %126 = vector.multi_reduction <maximumf>, %125, %cst_47 [1] : vector<8x8xf32> to vector<8xf32>
    %127 = vector.shape_cast %126 : vector<8xf32> to vector<8x1xf32>
    %128 = vector.broadcast %127 : vector<8x1xf32> to vector<8x8xf32>
    %129 = arith.subf %125, %128 : vector<8x8xf32>
    %130 = math.exp %129 : vector<8x8xf32>
    %cst_48 = arith.constant dense<0.000000e+00> : vector<8xf32>
    %131 = vector.multi_reduction <add>, %130, %cst_48 [1] : vector<8x8xf32> to vector<8xf32>
    %132 = vector.shape_cast %131 : vector<8xf32> to vector<8x1xf32>
    %133 = tpu.reciprocal %132 {approx = true} : vector<8x1xf32> -> vector<8x1xf32>
    %cst_49 = arith.constant dense<0.000000e+00> : vector<8x4xf32>
    %134 = tpu.matmul %130, %124, %cst_49 {dimension_numbers = #tpu.dot_dimension_numbers<[1], [0], [0], [1], [0, 0, 1, 1], [], []>} : vector<8x8xf32>, vector<8x4xf32>, vector<8x4xf32> -> vector<8x4xf32>
    %135 = vector.broadcast %133 : vector<8x1xf32> to vector<8x4xf32>
    %136 = arith.mulf %134, %135 : vector<8x4xf32>
    %c0_50 = arith.constant 0 : index
    %c0_51 = arith.constant 0 : index
    %c24 = arith.constant 24 : index
    %137 = vector.load %arg4[%c0_50, %c0_51, %c24] : memref<1x8x128xf32, #tpu.memory_space<vmem>>, vector<1x8x4xf32>
    %138 = vector.shape_cast %137 : vector<1x8x4xf32> to vector<8x4xf32>
    %139 = vector.shape_cast %136 : vector<8x4xf32> to vector<1x8x4xf32>
    tpu.vector_store %arg4[%c0_50, %c0_51, %c24], %139 {strides = array<i32>} : memref<1x8x128xf32, #tpu.memory_space<vmem>>, vector<1x8x4xf32>,
    %140 = vector.extract_strided_slice %9 {offsets = [0, 28], sizes = [8, 4], strides = [1, 1]} : vector<8x128xf32> to vector<8x4xf32>
    %141 = vector.extract_strided_slice %9 {offsets = [0, 60], sizes = [8, 4], strides = [1, 1]} : vector<8x128xf32> to vector<8x4xf32>
    %142 = vector.extract_strided_slice %9 {offsets = [0, 92], sizes = [8, 4], strides = [1, 1]} : vector<8x128xf32> to vector<8x4xf32>
    %cst_52 = arith.constant dense<0.000000e+00> : vector<8x8xf32>
    %143 = tpu.matmul %140, %141, %cst_52 {dimension_numbers = #tpu.dot_dimension_numbers<[1], [1], [0], [0], [0, 0, 1, 0], [], []>} : vector<8x4xf32>, vector<8x4xf32>, vector<8x8xf32> -> vector<8x8xf32>
    %cst_53 = arith.constant dense<0xFF800000> : vector<8xf32>
    %144 = vector.multi_reduction <maximumf>, %143, %cst_53 [1] : vector<8x8xf32> to vector<8xf32>
    %145 = vector.shape_cast %144 : vector<8xf32> to vector<8x1xf32>
    %146 = vector.broadcast %145 : vector<8x1xf32> to vector<8x8xf32>
    %147 = arith.subf %143, %146 : vector<8x8xf32>
    %148 = math.exp %147 : vector<8x8xf32>
    %cst_54 = arith.constant dense<0.000000e+00> : vector<8xf32>
    %149 = vector.multi_reduction <add>, %148, %cst_54 [1] : vector<8x8xf32> to vector<8xf32>
    %150 = vector.shape_cast %149 : vector<8xf32> to vector<8x1xf32>
    %151 = tpu.reciprocal %150 {approx = true} : vector<8x1xf32> -> vector<8x1xf32>
    %cst_55 = arith.constant dense<0.000000e+00> : vector<8x4xf32>
    %152 = tpu.matmul %148, %142, %cst_55 {dimension_numbers = #tpu.dot_dimension_numbers<[1], [0], [0], [1], [0, 0, 1, 1], [], []>} : vector<8x8xf32>, vector<8x4xf32>, vector<8x4xf32> -> vector<8x4xf32>
    %153 = vector.broadcast %151 : vector<8x1xf32> to vector<8x4xf32>
    %154 = arith.mulf %152, %153 : vector<8x4xf32>
    %c0_56 = arith.constant 0 : index
    %c0_57 = arith.constant 0 : index
    %c28 = arith.constant 28 : index
    %155 = vector.load %arg4[%c0_56, %c0_57, %c28] : memref<1x8x128xf32, #tpu.memory_space<vmem>>, vector<1x8x4xf32>
    %156 = vector.shape_cast %155 : vector<1x8x4xf32> to vector<8x4xf32>
    %157 = vector.shape_cast %154 : vector<8x4xf32> to vector<1x8x4xf32>
    tpu.vector_store %arg4[%c0_56, %c0_57, %c28], %157 {strides = array<i32>} : memref<1x8x128xf32, #tpu.memory_space<vmem>>, vector<1x8x4xf32>,
    return
  }
  func.func @transform_0(%arg0: i32) -> (i32, i32, i32) {
    %c0_i32 = arith.constant 0 : i32
    %c0_i32_0 = arith.constant 0 : i32
    %c0_i32_1 = arith.constant 0 : i32
    return %arg0, %c0_i32, %c0_i32_0 : i32, i32, i32
  }
  func.func @transform_1(%arg0: i32) -> (i32, i32) {
    %c0_i32 = arith.constant 0 : i32
    %c0_i32_0 = arith.constant 0 : i32
    %c0_i32_1 = arith.constant 0 : i32
    return %c0_i32, %c0_i32_0 : i32, i32
  }
  func.func @transform_2(%arg0: i32) -> (i32, i32) {
    %c0_i32 = arith.constant 0 : i32
    %c0_i32_0 = arith.constant 0 : i32
    %c0_i32_1 = arith.constant 0 : i32
    return %c0_i32, %c0_i32_0 : i32, i32
  }
  func.func @transform_3(%arg0: i32) -> (i32, i32, i32) {
    %c0_i32 = arith.constant 0 : i32
    %c0_i32_0 = arith.constant 0 : i32
    %c0_i32_1 = arith.constant 0 : i32
    return %arg0, %c0_i32, %c0_i32_0 : i32, i32, i32
  }
}

module attributes {stable_mosaic.version = 11 : i64} {
  func.func @_bn_relu_kernel(%arg0: i32, %arg1: memref<64x128xf32, #tpu.memory_space<vmem>>, %arg2: memref<1x128xf32, #tpu.memory_space<vmem>>, %arg3: memref<1x128xf32, #tpu.memory_space<vmem>>, %arg4: memref<64x128xf32, #tpu.memory_space<vmem>>) attributes {dimension_semantics = [#tpu.dimension_semantics<parallel>], iteration_bounds = array<i64: 1>, scalar_prefetch = 0 : i64, scratch_operands = 0 : i64, tpu.core_type = #tpu.core_type<tc>, window_params = [{transform_indices = @transform_0, window_bounds = array<i64: 64, 128>}, {pipeline_mode = #tpu.pipeline_mode<synchronous>, transform_indices = @transform_1, window_bounds = array<i64: 1, 128>}, {pipeline_mode = #tpu.pipeline_mode<synchronous>, transform_indices = @transform_2, window_bounds = array<i64: 1, 128>}, {transform_indices = @transform_3, window_bounds = array<i64: 64, 128>}]} {
    %c0 = arith.constant 0 : index
    %c0_0 = arith.constant 0 : index
    %0 = vector.load %arg1[%c0, %c0_0] : memref<64x128xf32, #tpu.memory_space<vmem>>, vector<64x128xf32>
    %c0_1 = arith.constant 0 : index
    %c0_2 = arith.constant 0 : index
    %1 = vector.load %arg2[%c0_1, %c0_2] : memref<1x128xf32, #tpu.memory_space<vmem>>, vector<1x128xf32>
    %2 = vector.broadcast %1 : vector<1x128xf32> to vector<64x128xf32>
    %3 = arith.mulf %0, %2 : vector<64x128xf32>
    %c0_3 = arith.constant 0 : index
    %c0_4 = arith.constant 0 : index
    %4 = vector.load %arg3[%c0_3, %c0_4] : memref<1x128xf32, #tpu.memory_space<vmem>>, vector<1x128xf32>
    %5 = vector.broadcast %4 : vector<1x128xf32> to vector<64x128xf32>
    %6 = arith.addf %3, %5 : vector<64x128xf32>
    %cst = arith.constant 0.000000e+00 : f32
    %7 = vector.broadcast %cst : f32 to vector<64x128xf32>
    %8 = arith.maximumf %6, %7 : vector<64x128xf32>
    %c0_5 = arith.constant 0 : index
    %c0_6 = arith.constant 0 : index
    %9 = vector.load %arg4[%c0_5, %c0_6] : memref<64x128xf32, #tpu.memory_space<vmem>>, vector<64x128xf32>
    tpu.vector_store %arg4[%c0_5, %c0_6], %8 {strides = array<i32>} : memref<64x128xf32, #tpu.memory_space<vmem>>, vector<64x128xf32>,
    return
  }
  func.func @transform_0(%arg0: i32) -> (i32, i32) {
    %c0_i32 = arith.constant 0 : i32
    %c0_i32_0 = arith.constant 0 : i32
    return %arg0, %c0_i32 : i32, i32
  }
  func.func @transform_1(%arg0: i32) -> (i32, i32) {
    %c0_i32 = arith.constant 0 : i32
    %c0_i32_0 = arith.constant 0 : i32
    %c0_i32_1 = arith.constant 0 : i32
    return %c0_i32, %c0_i32_0 : i32, i32
  }
  func.func @transform_2(%arg0: i32) -> (i32, i32) {
    %c0_i32 = arith.constant 0 : i32
    %c0_i32_0 = arith.constant 0 : i32
    %c0_i32_1 = arith.constant 0 : i32
    return %c0_i32, %c0_i32_0 : i32, i32
  }
  func.func @transform_3(%arg0: i32) -> (i32, i32) {
    %c0_i32 = arith.constant 0 : i32
    %c0_i32_0 = arith.constant 0 : i32
    return %arg0, %c0_i32 : i32, i32
  }
}

</mosaic_0001>

<bundles_post_ra>
// kernel: mul.3
= control target key start
LH: loop header
LB: loop body
LE: loop exit
PB: predicated region body
PF: predicated region fallthrough
CT: control target
= control target key end

     0   :  { %s34_s0 = inlined_call_operand.vmem [shape: f32[1,128], index: 0, kind: input, shape index: {}]   ;;  %s35_s1 = inlined_call_operand.vmem [shape: f32[1,128], index: 1, kind: input, shape index: {}]   ;;  %s36_s2 = inlined_call_operand.vmem [shape: f32[1,128], index: 2, kind: output, shape index: {}]  }
   0x1   :  { %v3_v0 = vld [vmem:[%s34_s0] sm:$0x1] }
   0x2   :  { %v4_v1 = vld [vmem:[%s35_s1] sm:$0x1] }
   0x3   :  { %v7_v2 = vmul.f32 %v4_v1, %v3_v0 }
   0x5   :  { %9 = vst [vmem:[%s36_s2] sm:$0x1] %v7_v2 }

// kernel: synorchou_graph_attention.6
= control target key start
LH: loop header
LB: loop body
LE: loop exit
PB: predicated region body
PF: predicated region fallthrough
CT: control target
= control target key end

     0   :  { %s442_s1 = inlined_call_operand.vmem [shape: f32[128,128], index: 1, kind: input, shape index: {}]   ;;  %s443_s0 = inlined_call_operand.vmem [shape: f32[64,128], index: 0, kind: input, shape index: {}]   ;;  %s444_s2 = inlined_call_operand.vmem [shape: f32[64,128], index: 2, kind: output, shape index: {0}]   ;;  %s445_s3 = inlined_call_operand.vmem [shape: f32[1,128], index: 3, kind: output, shape index: {1}]   ;;  %s446_s4 = inlined_call_operand.vmem [shape: f32[1,128], index: 4, kind: output, shape index: {2}]  }
   0x1   :  { %v22_v0 = vld [vmem:[%s442_s1] sm:$0xff]  ;;  %v23_v1 = vld [vmem:[%s442_s1 + $0x8] sm:$0xff]  ;;  %v24_v2 = vld [vmem:[%s442_s1 + $0x10] sm:$0xff] }
   0x2   :  { %v267_v3 = vpack.c.bf16 %v23_v1, %v22_v0  ;;  %v25_v4 = vld [vmem:[%s442_s1 + $0x18] sm:$0xff]  ;;  %v26_v6 = vld [vmem:[%s442_s1 + $0x20] sm:$0xff]  ;;  %v27_v7 = vld [vmem:[%s442_s1 + $0x28] sm:$0xff] }
   0x3   :  { %v271_v5 = vpack.c.bf16 %v25_v4, %v24_v2  ;;  %v275_v8 = vpack.c.bf16 %v27_v7, %v26_v6  ;;  %v14_v9 = vld [vmem:[%s443_s0] sm:$0xff]  ;;  %v28_v10 = vld [vmem:[%s442_s1 + $0x30] sm:$0xff]  ;;  %v29_v11 = vld [vmem:[%s442_s1 + $0x38] sm:$0xff] }
   0x4   :  { %268 = vmatprep.subr.bf16.mxu0 %v267_v3  ;;  %299 = vmatprep.subr.bf16.mxu1 %v267_v3  ;;  %v18_v12 = vld [vmem:[%s443_s0 + $0x20] sm:$0xff]  ;;  %v279_v13 = vpack.c.bf16 %v29_v11, %v28_v10  ;;  %v31_v15 = vld [vmem:[%s442_s1 + $0x48] sm:$0xff]  ;;  %v32_v17 = vld [vmem:[%s442_s1 + $0x50] sm:$0xff] }
   0x5   :  { %270 = vmatpush3.bf16.msra.mxu0 %v267_v3  ;;  %307 = vmatpush3.bf16.msra.mxu1 %v267_v3  ;;  %v30_v14 = vld [vmem:[%s442_s1 + $0x40] sm:$0xff]  ;;  %v33_v18 = vld [vmem:[%s442_s1 + $0x58] sm:$0xff]  ;;  %v35_v21 = vld [vmem:[%s442_s1 + $0x68] sm:$0xff] }
   0x6   :  { %272 = vmatprep.subr.bf16.mxu0 %v271_v5  ;;  %300 = vmatprep.subr.bf16.mxu1 %v271_v5  ;;  %v283_v16 = vpack.c.bf16 %v31_v15, %v30_v14  ;;  %v287_v19 = vpack.c.bf16 %v33_v18, %v32_v17  ;;  %v34_v20 = vld [vmem:[%s442_s1 + $0x60] sm:$0xff]  ;;  %v36_v23 = vld [vmem:[%s442_s1 + $0x70] sm:$0xff]  ;;  %v37_v24 = vld [vmem:[%s442_s1 + $0x78] sm:$0xff] }
   0x7   :  { %255 = vmatprep.mubr.f32.mxu0 %v14_v9  ;;  %261 = vmatprep.mubr.f32.mxu1 %v18_v12  ;;  %v291_v22 = vpack.c.bf16 %v35_v21, %v34_v20  ;;  %v295_v25 = vpack.c.bf16 %v37_v24, %v36_v23  ;;  %v15_v26 = vld [vmem:[%s443_s0 + $0x8] sm:$0xff]  ;;  %v16_v28 = vld [vmem:[%s443_s0 + $0x10] sm:$0xff]  ;;  %v17_v30 = vld [vmem:[%s443_s0 + $0x18] sm:$0xff] }
   0x8   :  { %v19_v27 = vld [vmem:[%s443_s0 + $0x28] sm:$0xff]  ;;  %v20_v29 = vld [vmem:[%s443_s0 + $0x30] sm:$0xff]  ;;  %v21_v31 = vld [vmem:[%s443_s0 + $0x38] sm:$0xff] }
   0x9   :  { %274 = vmatpush3.bf16.msra.mxu0 %v271_v5  ;;  %308 = vmatpush3.bf16.msra.mxu1 %v271_v5 }
   0xa   :  { %276 = vmatprep.subr.bf16.mxu0 %v275_v8  ;;  %301 = vmatprep.subr.bf16.mxu1 %v275_v8 }
   0xd   :  { %278 = vmatpush3.bf16.msra.mxu0 %v275_v8  ;;  %309 = vmatpush3.bf16.msra.mxu1 %v275_v8 }
   0xe   :  { %280 = vmatprep.subr.bf16.mxu0 %v279_v13  ;;  %302 = vmatprep.subr.bf16.mxu1 %v279_v13 }
  0x11   :  { %282 = vmatpush3.bf16.msra.mxu0 %v279_v13  ;;  %310 = vmatpush3.bf16.msra.mxu1 %v279_v13 }
  0x12   :  { %284 = vmatprep.subr.bf16.mxu0 %v283_v16  ;;  %303 = vmatprep.subr.bf16.mxu1 %v283_v16 }
  0x15   :  { %286 = vmatpush3.bf16.msra.mxu0 %v283_v16  ;;  %311 = vmatpush3.bf16.msra.mxu1 %v283_v16 }
  0x16   :  { %288 = vmatprep.subr.bf16.mxu0 %v287_v19  ;;  %304 = vmatprep.subr.bf16.mxu1 %v287_v19 }
  0x19   :  { %290 = vmatpush3.bf16.msra.mxu0 %v287_v19  ;;  %312 = vmatpush3.bf16.msra.mxu1 %v287_v19 }
  0x1a   :  { %292 = vmatprep.subr.bf16.mxu0 %v291_v22  ;;  %305 = vmatprep.subr.bf16.mxu1 %v291_v22 }
  0x1d   :  { %294 = vmatpush3.bf16.msra.mxu0 %v291_v22  ;;  %313 = vmatpush3.bf16.msra.mxu1 %v291_v22 }
  0x1e   :  { %296 = vmatprep.subr.bf16.mxu0 %v295_v25  ;;  %306 = vmatprep.subr.bf16.mxu1 %v295_v25 }
  0x21   :  { %298 = vmatpush3.bf16.msra.mxu0 %v295_v25  ;;  %314 = vmatpush3.bf16.msra.mxu1 %v295_v25 }
  0x24   :  { %256 = vmatmul.mubr.f32.vlgmr.msra.gmra.mrb[0].mxu0 %v15_v26  ;;  %262 = vmatmul.mubr.f32.vlgmr.msra.gmra.mrb[0].mxu1 %v19_v27 }
  0x25   :  { %258 = vmatprep.mubr.f32.mxu0 %v16_v28  ;;  %264 = vmatprep.mubr.f32.mxu1 %v20_v29 }
  0x28   :  { %259 = vmatmul.mubr.f32.gmra.mrb[2].mxu0 %v17_v30  ;;  %265 = vmatmul.mubr.f32.gmra.mrb[2].mxu1 %v21_v31 }
  0xf7   :  { %v257_v32 = vpop.f32.mrb[0].mxu0  ;;  %v263_v33 = vpop.f32.mrb[0].mxu1 }
  0xf8   :  { %144 = vst [vmem:[%s444_s2 + $0x8] sm:$0xff] %v257_v32  ;;  %v166_v34 = vmul.f32 %v257_v32, %v257_v32  ;;  %v104_v35 = vpop.f32.mrb[1].mxu0  ;;  %148 = vst [vmem:[%s444_s2 + $0x28] sm:$0xff] %v263_v33  ;;  %v124_v36 = vpop.f32.mrb[1].mxu1  ;;  %v170_v52 = vmul.f32 %v263_v33, %v263_v33 }
  0xf9   :  { %143 = vst [vmem:[%s444_s2] sm:$0xff] %v104_v35  ;;  %v151_v37 = vadd.f32 %v257_v32, %v104_v35  ;;  %v165_v38 = vmul.f32 %v104_v35, %v104_v35  ;;  %147 = vst [vmem:[%s444_s2 + $0x20] sm:$0xff] %v124_v36  ;;  %v169_v49 = vmul.f32 %v124_v36, %v124_v36 }
  0xfb   :  { %v173_v39 = vadd.f32 %v166_v34, %v165_v38  ;;  %v260_v40 = vpop.f32.mrb[2].mxu0  ;;  %v266_v41 = vpop.f32.mrb[2].mxu1 }
  0xfc   :  { %146 = vst [vmem:[%s444_s2 + $0x18] sm:$0xff] %v260_v40  ;;  %v114_v42 = vpop.f32.mrb[3].mxu0  ;;  %150 = vst [vmem:[%s444_s2 + $0x38] sm:$0xff] %v266_v41  ;;  %v134_v43 = vpop.f32.mrb[3].mxu1  ;;  %v168_v46 = vmul.f32 %v260_v40, %v260_v40  ;;  %v172_v58 = vmul.f32 %v266_v41, %v266_v41 }
  0xfd   :  { %145 = vst [vmem:[%s444_s2 + $0x10] sm:$0xff] %v114_v42  ;;  %v152_v44 = vadd.f32 %v151_v37, %v114_v42  ;;  %v167_v45 = vmul.f32 %v114_v42, %v114_v42  ;;  %149 = vst [vmem:[%s444_s2 + $0x30] sm:$0xff] %v134_v43  ;;  %v171_v55 = vmul.f32 %v134_v43, %v134_v43 }
  0xff   :  { %v153_v47 = vadd.f32 %v260_v40, %v152_v44  ;;  %v174_v48 = vadd.f32 %v173_v39, %v167_v45 }
 0x101   :  { %v175_v50 = vadd.f32 %v174_v48, %v168_v46  ;;  %v154_v51 = vadd.f32 %v153_v47, %v124_v36 }
 0x103   :  { %v176_v53 = vadd.f32 %v175_v50, %v169_v49  ;;  %v155_v54 = vadd.f32 %v263_v33, %v154_v51 }
 0x105   :  { %v156_v56 = vadd.f32 %v155_v54, %v134_v43  ;;  %v177_v57 = vadd.f32 %v176_v53, %v170_v52 }
 0x107   :  { %v157_v59 = vadd.f32 %v266_v41, %v156_v56  ;;  %v178_v60 = vadd.f32 %v177_v57, %v171_v55 }
 0x109   :  { %v158_v61 = vrot.slane %v157_v59, 4  ;;  %v179_v62 = vadd.f32 %v178_v60, %v172_v58 }
 0x10b   :  { %v159_v63 = vadd.f32 %v158_v61, %v157_v59  ;;  %v180_v0 = vrot.slane %v179_v62, 4 }
 0x10d   :  { %v160_v1 = vrot.slane %v159_v63, 2  ;;  %v181_v2 = vadd.f32 %v180_v0, %v179_v62 }
 0x10f   :  { %v161_v3 = vadd.f32 %v160_v1, %v159_v63  ;;  %v182_v4 = vrot.slane %v181_v2, 2 }
 0x111   :  { %v162_v5 = vrot.slane %v161_v3, 1  ;;  %v183_v6 = vadd.f32 %v182_v4, %v181_v2 }
 0x113   :  { %v163_v7 = vadd.f32 %v162_v5, %v161_v3  ;;  %v184_v8 = vrot.slane %v183_v6, 1 }
 0x115   :  { %164 = vst [vmem:[%s445_s3] sm:$0x1] %v163_v7  ;;  %v185_v9 = vadd.f32 %v184_v8, %v183_v6 }
 0x117   :  { %186 = vst [vmem:[%s446_s4] sm:$0x1] %v185_v9 }

// kernel: synorchou_graph_attention.7
= control target key start
LH: loop header
LB: loop body
LE: loop exit
PB: predicated region body
PF: predicated region fallthrough
CT: control target
= control target key end

     0   :  { %s148_s0 = inlined_call_operand.vmem [shape: f32[64,128], index: 0, kind: input, shape index: {}, may-alias: {0,3}]   ;;  %s149_s1 = inlined_call_operand.vmem [shape: f32[1,128], index: 1, kind: input, shape index: {}]   ;;  %s150_s2 = inlined_call_operand.vmem [shape: f32[1,128], index: 2, kind: input, shape index: {}]   ;;  %s151_s3 = inlined_call_operand.vmem [shape: f32[64,128], index: 3, kind: output, shape index: {}, may-alias: {0,3}]  }
   0x1   :  { %v14_v0 = vld [vmem:[%s148_s0] sm:$0xff]  ;;  %v15_v4 = vld [vmem:[%s148_s0 + $0x8] sm:$0xff]  ;;  %v16_v5 = vld [vmem:[%s148_s0 + $0x10] sm:$0xff] }
   0x2   :  { %v72_v1 = vld [vmem:[%s149_s1] ss:$0 sm:$0xff]  ;;  %v17_v6 = vld [vmem:[%s148_s0 + $0x18] sm:$0xff]  ;;  %v19_v11 = vld [vmem:[%s148_s0 + $0x28] sm:$0xff] }
   0x3   :  { %v73_v2 = vld [vmem:[%s150_s2] ss:$0 sm:$0xff]  ;;  %v29_v3 = vmul.f32 %v72_v1, %v14_v0  ;;  %v30_v7 = vmul.f32 %v72_v1, %v15_v4  ;;  %v31_v8 = vmul.f32 %v72_v1, %v16_v5  ;;  %v32_v9 = vmul.f32 %v72_v1, %v17_v6  ;;  %v20_v12 = vld [vmem:[%s148_s0 + $0x30] sm:$0xff]  ;;  %v21_v17 = vld [vmem:[%s148_s0 + $0x38] sm:$0xff] }
   0x4   :  { %v18_v10 = vld [vmem:[%s148_s0 + $0x20] sm:$0xff]  ;;  %v34_v15 = vmul.f32 %v72_v1, %v19_v11  ;;  %v35_v16 = vmul.f32 %v72_v1, %v20_v12  ;;  %v36_v21 = vmul.f32 %v72_v1, %v21_v17 }
   0x5   :  { %v44_v13 = vadd.f32 %v73_v2, %v29_v3  ;;  %v33_v14 = vmul.f32 %v72_v1, %v18_v10  ;;  %v45_v18 = vadd.f32 %v73_v2, %v30_v7  ;;  %v46_v19 = vadd.f32 %v73_v2, %v31_v8 }
   0x6   :  { %v47_v20 = vadd.f32 %v73_v2, %v32_v9  ;;  %v49_v24 = vadd.f32 %v73_v2, %v34_v15  ;;  %v50_v25 = vadd.f32 %v73_v2, %v35_v16  ;;  %v51_v29 = vadd.f32 %v73_v2, %v36_v21 }
   0x7   :  { %v52_v22 = vmax.f32 %v44_v13, 0.0  ;;  %v48_v23 = vadd.f32 %v73_v2, %v33_v14  ;;  %v53_v26 = vmax.f32 %v45_v18, 0.0  ;;  %v54_v27 = vmax.f32 %v46_v19, 0.0 }
   0x8   :  { %v55_v28 = vmax.f32 %v47_v20, 0.0  ;;  %v57_v31 = vmax.f32 %v49_v24, 0.0  ;;  %v58_v32 = vmax.f32 %v50_v25, 0.0  ;;  %v59_v33 = vmax.f32 %v51_v29, 0.0 }
   0x9   :  { %60 = vst [vmem:[%s151_s3] sm:$0xff] %v52_v22  ;;  %v56_v30 = vmax.f32 %v48_v23, 0.0  ;;  %61 = vst [vmem:[%s151_s3 + $0x8] sm:$0xff] %v53_v26 }
   0xa   :  { %62 = vst [vmem:[%s151_s3 + $0x10] sm:$0xff] %v54_v27  ;;  %63 = vst [vmem:[%s151_s3 + $0x18] sm:$0xff] %v55_v28 }
   0xb   :  { %64 = vst [vmem:[%s151_s3 + $0x20] sm:$0xff] %v56_v30  ;;  %65 = vst [vmem:[%s151_s3 + $0x28] sm:$0xff] %v57_v31 }
   0xc   :  { %66 = vst [vmem:[%s151_s3 + $0x30] sm:$0xff] %v58_v32  ;;  %67 = vst [vmem:[%s151_s3 + $0x38] sm:$0xff] %v59_v33 }

// kernel: synorchou_graph_attention.4
= control target key start
LH: loop header
LB: loop body
LE: loop exit
PB: predicated region body
PF: predicated region fallthrough
CT: control target
= control target key end

     0   :  { %vm30_vm0 = vcmask 523264   ;;  %s403_s1 = inlined_call_operand.vmem [shape: f32[64,128], index: 1, kind: input, shape index: {}]   ;;  %s404_s0 = inlined_call_operand.vmem [shape: f32[64,64], index: 0, kind: input, shape index: {}]   ;;  %s405_s2 = inlined_call_operand.vmem [shape: f32[64,128], index: 2, kind: output, shape index: {0}]   ;;  %s406_s3 = inlined_call_operand.vmem [shape: f32[1,128], index: 3, kind: output, shape index: {1}]   ;;  %s407_s4 = inlined_call_operand.vmem [shape: f32[1,128], index: 4, kind: output, shape index: {2}]  }
   0x1   :  { %v22_v0 = vld [vmem:[%s403_s1] sm:$0xff]  ;;  %v23_v1 = vld [vmem:[%s403_s1 + $0x8] sm:$0xff]  ;;  %v24_v2 = vld [vmem:[%s403_s1 + $0x10] sm:$0xff] }
   0x2   :  { %v268_v3 = vpack.c.bf16 %v23_v1, %v22_v0  ;;  %v25_v4 = vld [vmem:[%s403_s1 + $0x18] sm:$0xff]  ;;  %v26_v6 = vld [vmem:[%s403_s1 + $0x20] sm:$0xff]  ;;  %v27_v7 = vld [vmem:[%s403_s1 + $0x28] sm:$0xff] }
   0x3   :  { %v272_v5 = vpack.c.bf16 %v25_v4, %v24_v2  ;;  %v14_v8 = vld [vmem:[%s404_s0] sm:$0xff]  ;;  %v276_v10 = vpack.c.bf16 %v27_v7, %v26_v6  ;;  %v28_v11 = vld [vmem:[%s403_s1 + $0x30] sm:$0xff]  ;;  %v29_v12 = vld [vmem:[%s403_s1 + $0x38] sm:$0xff] }
   0x4   :  { %269 = vmatprep.subr.bf16.mxu0 %v268_v3  ;;  %284 = vmatprep.subr.bf16.mxu1 %v268_v3  ;;  %v18_v9 = vld [vmem:[%s404_s0 + $0x20] sm:$0xff]  ;;  %v280_v13 = vpack.c.bf16 %v29_v12, %v28_v11  ;;  %v15_v14 = vld [vmem:[%s404_s0 + $0x8] sm:$0xff]  ;;  %v16_v16 = vld [vmem:[%s404_s0 + $0x10] sm:$0xff] }
   0x5   :  { %271 = vmatpush3.bf16.msra.mxu0 %v268_v3  ;;  %288 = vmatpush3.bf16.msra.mxu1 %v268_v3  ;;  %v19_v15 = vld [vmem:[%s404_s0 + $0x28] sm:$0xff]  ;;  %v20_v17 = vld [vmem:[%s404_s0 + $0x30] sm:$0xff]  ;;  %v17_v18 = vld [vmem:[%s404_s0 + $0x18] sm:$0xff] }
   0x6   :  { %273 = vmatprep.subr.bf16.mxu0 %v272_v5  ;;  %285 = vmatprep.subr.bf16.mxu1 %v272_v5  ;;  %v21_v19 = vld [vmem:[%s404_s0 + $0x38] sm:$0xff] }
   0x7   :  { %256 = vmatprep.mubr.msk.f32.mxu0 %vm30_vm0, %v14_v8  ;;  %262 = vmatprep.mubr.msk.f32.mxu1 %vm30_vm0, %v18_v9 }
   0x9   :  { %275 = vmatpush3.bf16.msra.mxu0 %v272_v5  ;;  %289 = vmatpush3.bf16.msra.mxu1 %v272_v5 }
   0xa   :  { %277 = vmatprep.subr.bf16.mxu0 %v276_v10  ;;  %286 = vmatprep.subr.bf16.mxu1 %v276_v10 }
   0xd   :  { %279 = vmatpush3.bf16.msra.mxu0 %v276_v10  ;;  %290 = vmatpush3.bf16.msra.mxu1 %v276_v10 }
   0xe   :  { %281 = vmatprep.subr.bf16.mxu0 %v280_v13  ;;  %287 = vmatprep.subr.bf16.mxu1 %v280_v13 }
  0x11   :  { %283 = vmatpush3.bf16.msra.mxu0 %v280_v13  ;;  %291 = vmatpush3.bf16.msra.mxu1 %v280_v13 }
  0x14   :  { %257 = vmatmul.mubr.msk.f32.vlgmr.msra.gmra.mrb[0].mxu0 %vm30_vm0, %v15_v14  ;;  %263 = vmatmul.mubr.msk.f32.vlgmr.msra.gmra.mrb[0].mxu1 %vm30_vm0, %v19_v15 }
  0x15   :  { %259 = vmatprep.mubr.msk.f32.mxu0 %vm30_vm0, %v16_v16  ;;  %265 = vmatprep.mubr.msk.f32.mxu1 %vm30_vm0, %v20_v17 }
  0x18   :  { %260 = vmatmul.mubr.msk.f32.gmra.mrb[2].mxu0 %vm30_vm0, %v17_v18  ;;  %266 = vmatmul.mubr.msk.f32.gmra.mrb[2].mxu1 %vm30_vm0, %v21_v19 }
  0xe7   :  { %v258_v20 = vpop.f32.mrb[0].mxu0  ;;  %v264_v21 = vpop.f32.mrb[0].mxu1 }
  0xe8   :  { %161 = vst [vmem:[%s405_s2 + $0x8] sm:$0xff] %v258_v20  ;;  %v183_v22 = vmul.f32 %v258_v20, %v258_v20  ;;  %v121_v23 = vpop.f32.mrb[1].mxu0  ;;  %165 = vst [vmem:[%s405_s2 + $0x28] sm:$0xff] %v264_v21  ;;  %v141_v24 = vpop.f32.mrb[1].mxu1  ;;  %v187_v40 = vmul.f32 %v264_v21, %v264_v21 }
  0xe9   :  { %160 = vst [vmem:[%s405_s2] sm:$0xff] %v121_v23  ;;  %v168_v25 = vadd.f32 %v258_v20, %v121_v23  ;;  %v182_v26 = vmul.f32 %v121_v23, %v121_v23  ;;  %164 = vst [vmem:[%s405_s2 + $0x20] sm:$0xff] %v141_v24  ;;  %v186_v37 = vmul.f32 %v141_v24, %v141_v24 }
  0xeb   :  { %v190_v27 = vadd.f32 %v183_v22, %v182_v26  ;;  %v261_v28 = vpop.f32.mrb[2].mxu0  ;;  %v267_v29 = vpop.f32.mrb[2].mxu1 }
  0xec   :  { %163 = vst [vmem:[%s405_s2 + $0x18] sm:$0xff] %v261_v28  ;;  %v131_v30 = vpop.f32.mrb[3].mxu0  ;;  %167 = vst [vmem:[%s405_s2 + $0x38] sm:$0xff] %v267_v29  ;;  %v151_v31 = vpop.f32.mrb[3].mxu1  ;;  %v185_v34 = vmul.f32 %v261_v28, %v261_v28  ;;  %v189_v46 = vmul.f32 %v267_v29, %v267_v29 }
  0xed   :  { %162 = vst [vmem:[%s405_s2 + $0x10] sm:$0xff] %v131_v30  ;;  %v169_v32 = vadd.f32 %v168_v25, %v131_v30  ;;  %v184_v33 = vmul.f32 %v131_v30, %v131_v30  ;;  %166 = vst [vmem:[%s405_s2 + $0x30] sm:$0xff] %v151_v31  ;;  %v188_v43 = vmul.f32 %v151_v31, %v151_v31 }
  0xef   :  { %v170_v35 = vadd.f32 %v261_v28, %v169_v32  ;;  %v191_v36 = vadd.f32 %v190_v27, %v184_v33 }
  0xf1   :  { %v192_v38 = vadd.f32 %v191_v36, %v185_v34  ;;  %v171_v39 = vadd.f32 %v170_v35, %v141_v24 }
  0xf3   :  { %v193_v41 = vadd.f32 %v192_v38, %v186_v37  ;;  %v172_v42 = vadd.f32 %v264_v21, %v171_v39 }
  0xf5   :  { %v173_v44 = vadd.f32 %v172_v42, %v151_v31  ;;  %v194_v45 = vadd.f32 %v193_v41, %v187_v40 }
  0xf7   :  { %v174_v47 = vadd.f32 %v267_v29, %v173_v44  ;;  %v195_v48 = vadd.f32 %v194_v45, %v188_v43 }
  0xf9   :  { %v175_v49 = vrot.slane %v174_v47, 4  ;;  %v196_v50 = vadd.f32 %v195_v48, %v189_v46 }
  0xfb   :  { %v176_v51 = vadd.f32 %v175_v49, %v174_v47  ;;  %v197_v52 = vrot.slane %v196_v50, 4 }
  0xfd   :  { %v177_v53 = vrot.slane %v176_v51, 2  ;;  %v198_v54 = vadd.f32 %v197_v52, %v196_v50 }
  0xff   :  { %v178_v55 = vadd.f32 %v177_v53, %v176_v51  ;;  %v199_v56 = vrot.slane %v198_v54, 2 }
 0x101   :  { %v179_v57 = vrot.slane %v178_v55, 1  ;;  %v200_v58 = vadd.f32 %v199_v56, %v198_v54 }
 0x103   :  { %v180_v59 = vadd.f32 %v179_v57, %v178_v55  ;;  %v201_v60 = vrot.slane %v200_v58, 1 }
 0x105   :  { %181 = vst [vmem:[%s406_s3] sm:$0x1] %v180_v59  ;;  %v202_v61 = vadd.f32 %v201_v60, %v200_v58 }
 0x107   :  { %203 = vst [vmem:[%s407_s4] sm:$0x1] %v202_v61 }

// kernel: synorchou_graph_attention.5
= control target key start
LH: loop header
LB: loop body
LE: loop exit
PB: predicated region body
PF: predicated region fallthrough
CT: control target
= control target key end

     0   :  { %s1882_s12 = smov 0   ;;  %s2058_s0 = inlined_call_operand.vmem [shape: f32[8,8,128], index: 0, kind: input, shape index: {}]   ;;  %s2059_s1 = inlined_call_operand.vmem [shape: f32[1,128], index: 1, kind: input, shape index: {}]   ;;  %s2060_s2 = inlined_call_operand.vmem [shape: f32[1,128], index: 2, kind: input, shape index: {}]   ;;  %s2061_s3 = inlined_call_operand.vmem [shape: f32[8,8,128], index: 3, kind: output, shape index: {}]  }
   0x1 LB: > { %s1603_s13 = sadd.s32 4294967295, %s1828_s12   ;;  %p1607_p0 = scmp.ge.s32.totalorder %s1828_s12, 1  ;;  %s1828_s12 = sphi %s1882_s12, %s13_s12  }
   0x2   : > { %p136_p1 = scmp.lt.s32.totalorder %s1828_s12, 9 }
   0x4   : > { %p137_p2 = pnand %p1607_p0, %p136_p1 }
   0x5   : > { %p158_p3 = scmp.lt.s32.totalorder (!%p137_p2), %s1603_s13, 7  ;;  %v1830_v0 = vmov (!%p137_p2), 0.0   ;;  %vm1831_vm0 = vmmov (!%p137_p2), 0   ;;  %v1610_v1 = vld [vmem:[%s2059_s1] ss:$0 sm:$0xff] (!%p137_p2)  ;;  %s1832_s22 = smov (!%p137_p2), 96  }
   0x6   : > { %140 = sbr.rel (%p137_p2) target bundleno = 1401 (0x579), region = 32  ;;  %1670 = vmatprep.subr.mxu0 (!%p137_p2), %v1830_v0  ;;  %1672 = vmatprep.mubr.msk.f32.mxu0 (!%p137_p2), %vm1831_vm0, %v1830_v0  ;;  %v1611_v3 = vld [vmem:[%s2060_s2] ss:$0 sm:$0xff] (!%p137_p2)  ;;  %vm189_vm1 = vcmask (!%p137_p2), 31744   ;;  %s1833_s23 = smov (!%p137_p2), 64   ;;  %vm264_vm2 = vcmask (!%p137_p2), 64512  }
   0x7   : > { %1675 = vmatprep.subr.mxu1 (!%p137_p2), %v1830_v0  ;;  %1677 = vmatprep.mubr.msk.f32.mxu1 (!%p137_p2), %vm1831_vm0, %v1830_v0  ;;  %s1834_s24 = smov (!%p137_p2), 92   ;;  %s1835_s25 = smov (!%p137_p2), 124   ;;  %vm184_vm3 = vcmask (!%p137_p2), 1047808   ;;  %vm522_vm4 = vcmask (!%p137_p2), 64544   ;;  %vm693_vm5 = vcmask (!%p137_p2), 97344   ;;  %vm864_vm6 = vcmask (!%p137_p2), 130144  }
   0x8   : > { %s1836_s26 = smov (!%p137_p2), 88   ;;  %s1837_s27 = smov (!%p137_p2), 120   ;;  %vm1035_vm7 = vcmask (!%p137_p2), 162944   ;;  %vm1206_vm8 = vcmask (!%p137_p2), 195744   ;;  %vm1377_vm9 = vcmask (!%p137_p2), 228544   ;;  %vm1548_vm10 = vcmask (!%p137_p2), 261344  }
   0x9   : > { %s1838_s28 = smov (!%p137_p2), 84   ;;  %s1839_s29 = smov (!%p137_p2), 116  }
   0xa   : > { %s1840_s30 = smov (!%p137_p2), 80   ;;  %s1841_s4 = smov (!%p137_p2), 112  }
   0xb   : > { %s1842_s5 = smov (!%p137_p2), 108   ;;  %s1843_s6 = smov (!%p137_p2), 72  }
   0xc   : > { %s1844_s7 = smov (!%p137_p2), 104   ;;  %s1845_s8 = smov (!%p137_p2), 68  }
   0xd   : > { %s2063_s13 = smov (!%p158_p3, %s1603_s13), 7  ;;  %s1846_s9 = smov 100  }
   0xe   : > { %s1608_s14 = sshll.u32 %s2063_s13, 3  ;;  %s1847_s10 = smov 76  }
   0xf   : > { %s161_s19 = scalar_lea.vmem %s2058_s0, %s1608_s14  ;;  %s1848_s11 = smov 56  }
  0x10   : > { %v166_v2 = vld [vmem:[%s161_s19] sm:$0xff]  ;;  %s1849_s15 = smov 60   ;;  %s1850_s16 = smov 52  }
  0x11   : > { %v174_v4 = vmul.f32 %v1610_v1, %v166_v2  ;;  %s1851_s17 = smov 48   ;;  %s1852_s18 = smov 44  }
  0x12   : > { %s1853_s19 = smov 36   ;;  %s1854_s20 = smov 40  }
  0x13   : > { %v182_v5 = vadd.f32 %v1611_v3, %v174_v4  ;;  %s1855_s13 = smov 4  }
  0x15   : > { %v1910_v6 = vmax.f32 %v182_v5, 0.0 }
  0x17   : > { %187 = vrot.lane.b32.xlu0 %v1910_v6, %s1832_s22  ;;  %275 = vrot.lane.b32.xlu1 %v1910_v6, %s1833_s23  ;;  %s2007_s23 = scalar_lea.vmem %s2061_s3, %s1608_s14  ;;  %s1856_s14 = smov 8  }
  0x18   : > { %185 = vst.msk [vmem:[%s2007_s23] sm:$0xff] %vm184_vm3, %v1830_v0 }
  0x1b   : > { %355 = vrot.lane.b32.xlu1 %v1910_v6, %s1834_s24  ;;  %s1857_s24 = smov 12  }
  0x1f   : > { %353 = vrot.lane.b32.xlu1 %v1910_v6, %s1835_s25  ;;  %s1858_s25 = smov 16  }
  0x23   : > { %526 = vrot.lane.b32.xlu1 %v1910_v6, %s1836_s26  ;;  %s1859_s26 = smov 20  }
  0x27   : > { %524 = vrot.lane.b32.xlu1 %v1910_v6, %s1837_s27  ;;  %s1860_s27 = smov 24  }
  0x2b   : > { %697 = vrot.lane.b32.xlu1 %v1910_v6, %s1838_s28  ;;  %s1861_s28 = smov 28  }
  0x2f   : > { %695 = vrot.lane.b32.xlu1 %v1910_v6, %s1839_s29 }
  0x33   : > { %868 = vrot.lane.b32.xlu1 %v1910_v6, %s1840_s30 }
  0x37   : > { %866 = vrot.lane.b32.xlu1 %v1910_v6, %s1841_s4 }
  0x3b   : > { %1037 = vrot.lane.b32.xlu1 %v1910_v6, %s1842_s5 }
  0x3f   : > { %1210 = vrot.lane.b32.xlu1 %v1910_v6, %s1843_s6 }
  0x43   : > { %1208 = vrot.lane.b32.xlu1 %v1910_v6, %s1844_s7 }
  0x47   : > { %1381 = vrot.lane.b32.xlu1 %v1910_v6, %s1845_s8 }
  0x4b   : > { %1379 = vrot.lane.b32.xlu1 %v1910_v6, %s1846_s9 }
  0x4f   : > { %612 = vrot.lane.b32.xlu1 %v1910_v6, %s1848_s11 }
  0x53   : > { %783 = vrot.lane.b32.xlu1 %v1910_v6, %s1850_s16 }
  0x89   : > { %v188_v7 = vpop.permute.xlu0 %187  ;;  %v276_v8 = vpop.permute.xlu1 %275 }
  0x8a   : > { %1671 = vmatpush3.xpose.msk.msra.mxu0 %vm189_vm1, %v188_v7  ;;  %1676 = vmatpush3.msra.mxu1 %v276_v8 }
  0x8b   : > { %1685 = vmatprep.subr.mxu0 %v1830_v0  ;;  %1680 = vmatprep.subr.mxu1 %v1830_v0 }
  0x8d   : > { %1673 = vmatmul.mubr.msk.f32.vlgmr.msra.gmra.mrb[0].mxu0 %vm189_vm1, %v1910_v6  ;;  %v356_v12 = vpop.permute.xlu1 %355 }
  0x8e   : > { %1687 = vmatprep.mubr.msk.f32.mxu0 %vm1831_vm0, %v1830_v0 }
  0x91   : > { %v354_v13 = vpop.permute.xlu1 %353 }
  0x95   : > { %v527_v14 = vpop.permute.xlu1 %526 }
  0x99   : > { %v525_v15 = vpop.permute.xlu1 %524 }
  0x9d   : > { %v698_v16 = vpop.permute.xlu1 %697 }
  0xa1   : > { %v696_v19 = vpop.permute.xlu1 %695 }
  0xa5   : > { %v869_v21 = vpop.permute.xlu1 %868 }
  0xa9   : > { %v867_v22 = vpop.permute.xlu1 %866 }
  0xad   : > { %v1038_v24 = vpop.permute.xlu1 %1037 }
  0xb1   : > { %v1211_v25 = vpop.permute.xlu1 %1210 }
  0xb5   : > { %v1209_v27 = vpop.permute.xlu1 %1208 }
  0xb9   : > { %v1382_v28 = vpop.permute.xlu1 %1381 }
  0xbd   : > { %v1380_v29 = vpop.permute.xlu1 %1379 }
  0xc1   : > { %v613_v55 = vpop.permute.xlu1 %612 }
  0xc5   : > { %v784_v56 = vpop.permute.xlu1 %783 }
 0x160   : > { %v260_v9 = vpop.f32.mrb[0].mxu0 }
 0x161   : > { %v1674_v10 = vpop.f32.mrb[1].mxu0  ;;  %v265_v11 = vsel %vm264_vm2, %v260_v9, -inf }
 0x162   : > { %266 = vmax.xlane.f32.xlu0 %v265_v11 }
 0x178   : > { %1039 = vrot.lane.b32.xlu0 %v1910_v6, %s1847_s10 }
 0x17c   : > { %441 = vrot.lane.b32.xlu0 %v1910_v6, %s1849_s15 }
 0x1ef   : > { %v267_v17 = vpop.xlane.xlu0 %266 }
 0x1f0   : > { %v268_v18 = vsub.f32 %v260_v9, %v267_v17 }
 0x1f2   : > { %v269_v20 = vmul.f32 1.442695, %v268_v18 }
 0x1f3   : > { %v1040_v26 = vpop.permute.xlu0 %1039 }
 0x1f4   : > { %1790 = vpow2.f32 %v269_v20 }
 0x1f7   : > { %v442_v45 = vpop.permute.xlu0 %441 }
 0x1f8   : > { %1686 = vmatpush3.msra.mxu0 %v442_v45 }
 0x1f9   : > { %1695 = vmatprep.subr.mxu0 %v1830_v0 }
 0x1fe   : > { %v1939_v23 = vpop.eup %1790 }
 0x1ff   : > { %1678 = vmatmul.mubr.msk.f32.vlgmr.msra.gmra.mrb[0].mxu1 %vm264_vm2, %v1939_v23  ;;  %v271_v54 = vsel %vm264_vm2, %v1939_v23, 0.0 }
 0x200   : > { %1681 = vmatpush3.xpose.msk.msra.mxu1 %vm189_vm1, %v356_v12  ;;  %1682 = vmatprep.mubr.msk.f32.mxu1 %vm1831_vm0, %v1830_v0 }
 0x201   : > { %1690 = vmatprep.subr.mxu1 %v1830_v0 }
 0x203   : > { %1683 = vmatmul.mubr.msk.f32.vlgmr.msra.gmra.mrb[2].mxu1 %vm189_vm1, %v354_v13 }
 0x204   : > { %1691 = vmatpush3.xpose.msk.msra.mxu1 %vm189_vm1, %v527_v14  ;;  %1692 = vmatprep.mubr.msk.f32.mxu1 %vm1831_vm0, %v1830_v0 }
 0x205   : > { %1700 = vmatprep.subr.mxu1 %v1830_v0 }
 0x207   : > { %1693 = vmatmul.mubr.msk.f32.vlgmr.msra.gmra.mrb[4].mxu1 %vm189_vm1, %v525_v15 }
 0x208   : > { %1701 = vmatpush3.xpose.msk.msra.mxu1 %vm189_vm1, %v698_v16  ;;  %1702 = vmatprep.mubr.msk.f32.mxu1 %vm1831_vm0, %v1830_v0 }
 0x209   : > { %1710 = vmatprep.subr.mxu1 %v1830_v0 }
 0x20b   : > { %1703 = vmatmul.mubr.msk.f32.vlgmr.msra.gmra.mrb[6].mxu1 %vm189_vm1, %v696_v19 }
 0x20c   : > { %1711 = vmatpush3.xpose.msk.msra.mxu1 %vm189_vm1, %v869_v21  ;;  %1712 = vmatprep.mubr.msk.f32.mxu1 %vm1831_vm0, %v1830_v0 }
 0x20d   : > { %1720 = vmatprep.subr.mxu1 %v1830_v0 }
 0x20f   : > { %1713 = vmatmul.mubr.msk.f32.vlgmr.msra.gmra.mrb[8].mxu1 %vm189_vm1, %v867_v22 }
 0x210   : > { %1721 = vmatpush3.xpose.msk.msra.mxu1 %vm189_vm1, %v1040_v26  ;;  %1722 = vmatprep.mubr.msk.f32.mxu1 %vm1831_vm0, %v1830_v0 }
 0x211   : > { %1730 = vmatprep.subr.mxu1 %v1830_v0 }
 0x213   : > { %1723 = vmatmul.mubr.msk.f32.vlgmr.msra.gmra.mrb[10].mxu1 %vm189_vm1, %v1038_v24 }
 0x214   : > { %1731 = vmatpush3.xpose.msk.msra.mxu1 %vm189_vm1, %v1211_v25  ;;  %1732 = vmatprep.mubr.msk.f32.mxu1 %vm1831_vm0, %v1830_v0 }
 0x215   : > { %1740 = vmatprep.subr.mxu1 %v1830_v0 }
 0x217   : > { %1733 = vmatmul.mubr.msk.f32.vlgmr.msra.gmra.mrb[12].mxu1 %vm189_vm1, %v1209_v27 }
 0x218   : > { %1741 = vmatpush3.xpose.msk.msra.mxu1 %vm189_vm1, %v1382_v28  ;;  %1742 = vmatprep.mubr.msk.f32.mxu1 %vm1831_vm0, %v1830_v0 }
 0x21b   : > { %1743 = vmatmul.mubr.msk.f32.vlgmr.msra.gmra.mrb[14].mxu1 %vm189_vm1, %v1380_v29 }
 0x2d2   : > { %v1977_v30 = vpop.f32.mrb[0].mxu1 }
 0x2d3   : > { %v1679_v31 = vpop.f32.mrb[1].mxu1 }
 0x2d6   : > { %v427_v32 = vpop.f32.mrb[2].mxu1 }
 0x2d7   : > { %v1684_v33 = vpop.f32.mrb[3].mxu1  ;;  %v431_v34 = vsel %vm264_vm2, %v427_v32, -inf }
 0x2d8   : > { %432 = vmax.xlane.f32.xlu1 %v431_v34 }
 0x2da   : > { %v598_v35 = vpop.f32.mrb[4].mxu1 }
 0x2db   : > { %v602_v36 = vsel %vm264_vm2, %v598_v35, -inf  ;;  %v1694_v37 = vpop.f32.mrb[5].mxu1 }
 0x2dc   : > { %603 = vmax.xlane.f32.xlu0 %v602_v36 }
 0x2de   : > { %v769_v38 = vpop.f32.mrb[6].mxu1 }
 0x2df   : > { %v773_v39 = vsel %vm264_vm2, %v769_v38, -inf  ;;  %v1704_v40 = vpop.f32.mrb[7].mxu1 }
 0x2e0   : > { %774 = vmax.xlane.f32.xlu0 %v773_v39 }
 0x2e2   : > { %v940_v41 = vpop.f32.mrb[8].mxu1 }
 0x2e3   : > { %v944_v42 = vsel %vm264_vm2, %v940_v41, -inf  ;;  %v1714_v43 = vpop.f32.mrb[9].mxu1 }
 0x2e4   : > { %945 = vmax.xlane.f32.xlu0 %v944_v42 }
 0x2e6   : > { %v1983_v44 = vpop.f32.mrb[10].mxu1 }
 0x2e7   : > { %v1724_v46 = vpop.f32.mrb[11].mxu1  ;;  %v1115_v52 = vsel %vm264_vm2, %v1983_v44, -inf }
 0x2e9   : > { %954 = vrot.lane.b32.xlu1 %v1910_v6, %s1851_s17 }
 0x2ea   : > { %v1987_v47 = vpop.f32.mrb[12].mxu1 }
 0x2eb   : > { %v1286_v48 = vsel %vm264_vm2, %v1987_v47, -inf  ;;  %v1734_v49 = vpop.f32.mrb[13].mxu1 }
 0x2ec   : > { %1287 = vmax.xlane.f32.xlu0 %v1286_v48 }
 0x2ee   : > { %v1991_v50 = vpop.f32.mrb[14].mxu1 }
 0x2ef   : > { %v1744_v51 = vpop.f32.mrb[15].mxu1  ;;  %v1457_v53 = vsel %vm264_vm2, %v1991_v50, -inf }
 0x302   : > { %1125 = vrot.lane.b32.xlu0 %v1910_v6, %s1852_s18 }
 0x306   : > { %1467 = vrot.lane.b32.xlu0 %v1910_v6, %s1853_s19 }
 0x30d   : > { %1116 = vmax.xlane.f32.xlu1 %v1115_v52 }
 0x311   : > { %1458 = vmax.xlane.f32.xlu1 %v1457_v53 }
 0x322   : > { %1296 = vrot.lane.b32.xlu1 %v1910_v6, %s1854_s20 }
 0x346   : > { %272 = vadd.xlane.f32.xlu1 %v271_v54 }
 0x365   : > { %v433_v57 = vpop.xlane.xlu1 %432 }
 0x366   : > { %v434_v58 = vsub.f32 %v427_v32, %v433_v57 }
 0x368   : > { %v435_v59 = vmul.f32 1.442695, %v434_v58 }
 0x369   : > { %v604_v60 = vpop.xlane.xlu0 %603  ;;  %v955_v11 = vpop.permute.xlu1 %954 }
 0x36a   : > { %1792 = vpow2.f32 %v435_v59  ;;  %v605_v61 = vsub.f32 %v598_v35, %v604_v60 }
 0x36c   : > { %v606_v62 = vmul.f32 1.442695, %v605_v61 }
 0x36d   : > { %v775_v63 = vpop.xlane.xlu0 %774 }
 0x36e   : > { %1794 = vpow2.f32 %v606_v62  ;;  %v776_v1 = vsub.f32 %v769_v38, %v775_v63 }
 0x370   : > { %v777_v2 = vmul.f32 1.442695, %v776_v1 }
 0x371   : > { %v946_v3 = vpop.xlane.xlu0 %945 }
 0x372   : > { %1796 = vpow2.f32 %v777_v2  ;;  %v947_v4 = vsub.f32 %v940_v41, %v946_v3 }
 0x374   : > { %v1793_v5 = vpop.eup %1792  ;;  %v948_v6 = vmul.f32 1.442695, %v947_v4 }
 0x375   : > { %1688 = vmatmul.mubr.msk.f32.vlgmr.msra.gmra.mrb[2].mxu0 %vm264_vm2, %v1793_v5  ;;  %v437_v7 = vsel %vm264_vm2, %v1793_v5, 0.0 }
 0x376   : > { %1798 = vpow2.f32 %v948_v6  ;;  %1696 = vmatpush3.msra.mxu0 %v613_v55  ;;  %438 = vadd.xlane.f32.xlu0 %v437_v7 }
 0x377   : > { %1697 = vmatprep.mubr.msk.f32.mxu0 %vm1831_vm0, %v1830_v0  ;;  %1705 = vmatprep.subr.mxu0 %v1830_v0 }
 0x378   : > { %v1795_v8 = vpop.eup %1794 }
 0x379   : > { %1698 = vmatmul.mubr.msk.f32.vlgmr.msra.gmra.mrb[4].mxu0 %vm264_vm2, %v1795_v8  ;;  %v608_v9 = vsel %vm264_vm2, %v1795_v8, 0.0  ;;  %v1288_v10 = vpop.xlane.xlu0 %1287 }
 0x37a   : > { %1706 = vmatpush3.msra.mxu0 %v784_v56  ;;  %609 = vadd.xlane.f32.xlu1 %v608_v9  ;;  %v1289_v17 = vsub.f32 %v1987_v47, %v1288_v10 }
 0x37b   : > { %1707 = vmatprep.mubr.msk.f32.mxu0 %vm1831_vm0, %v1830_v0  ;;  %1715 = vmatprep.subr.mxu0 %v1830_v0 }
 0x37c   : > { %v1797_v12 = vpop.eup %1796  ;;  %v1290_v20 = vmul.f32 1.442695, %v1289_v17 }
 0x37d   : > { %1708 = vmatmul.mubr.msk.f32.vlgmr.msra.gmra.mrb[6].mxu0 %vm264_vm2, %v1797_v12  ;;  %v779_v13 = vsel %vm264_vm2, %v1797_v12, 0.0  ;;  %v1126_v14 = vpop.permute.xlu0 %1125 }
 0x37e   : > { %780 = vadd.xlane.f32.xlu1 %v779_v13  ;;  %1716 = vmatpush3.msra.mxu0 %v955_v11 }
 0x37f   : > { %1717 = vmatprep.mubr.msk.f32.mxu0 %vm1831_vm0, %v1830_v0  ;;  %1725 = vmatprep.subr.mxu0 %v1830_v0 }
 0x380   : > { %v1799_v15 = vpop.eup %1798 }
 0x381   : > { %1718 = vmatmul.mubr.msk.f32.vlgmr.msra.gmra.mrb[8].mxu0 %vm264_vm2, %v1799_v15  ;;  %v950_v16 = vsel %vm264_vm2, %v1799_v15, 0.0  ;;  %v1468_v29 = vpop.permute.xlu0 %1467 }
 0x382   : > { %951 = vadd.xlane.f32.xlu1 %v950_v16  ;;  %1726 = vmatpush3.msra.mxu0 %v1126_v14 }
 0x383   : > { %1727 = vmatprep.mubr.msk.f32.mxu0 %vm1831_vm0, %v1830_v0  ;;  %1735 = vmatprep.subr.mxu0 %v1830_v0 }
 0x39a   : > { %v1117_v18 = vpop.xlane.xlu1 %1116 }
 0x39b   : > { %v1118_v19 = vsub.f32 %v1983_v44, %v1117_v18 }
 0x39d   : > { %v1119_v21 = vmul.f32 1.442695, %v1118_v19 }
 0x39e   : > { %v1459_v22 = vpop.xlane.xlu1 %1458 }
 0x39f   : > { %1800 = vpow2.f32 %v1119_v21  ;;  %v1460_v23 = vsub.f32 %v1991_v50, %v1459_v22 }
 0x3a0   : > { %1802 = vpow2.f32 %v1290_v20 }
 0x3a1   : > { %v1461_v24 = vmul.f32 1.442695, %v1460_v23 }
 0x3a2   : > { %v1297_v25 = vpop.permute.xlu1 %1296 }
 0x3a3   : > { %1804 = vpow2.f32 %v1461_v24 }
 0x3a9   : > { %v1801_v26 = vpop.eup %1800 }
 0x3aa   : > { %1728 = vmatmul.mubr.msk.f32.vlgmr.msra.gmra.mrb[10].mxu0 %vm264_vm2, %v1801_v26  ;;  %v1121_v27 = vsel %vm264_vm2, %v1801_v26, 0.0  ;;  %v1803_v28 = vpop.eup %1802 }
 0x3ab   : > { %1122 = vadd.xlane.f32.xlu1 %v1121_v27  ;;  %1736 = vmatpush3.msra.mxu0 %v1297_v25  ;;  %v1292_v31 = vsel %vm264_vm2, %v1803_v28, 0.0 }
 0x3ac   : > { %1737 = vmatprep.mubr.msk.f32.mxu0 %vm1831_vm0, %v1830_v0  ;;  %1745 = vmatprep.subr.mxu0 %v1830_v0 }
 0x3ad   : > { %v1805_v32 = vpop.eup %1804 }
 0x3ae   : > { %1738 = vmatmul.mubr.msk.f32.vlgmr.msra.gmra.mrb[12].mxu0 %vm264_vm2, %v1803_v28  ;;  %v1463_v54 = vsel %vm264_vm2, %v1805_v32, 0.0 }
 0x3af   : > { %1293 = vadd.xlane.f32.xlu1 %v1292_v31  ;;  %1746 = vmatpush3.msra.mxu0 %v1468_v29 }
 0x3b0   : > { %1747 = vmatprep.mubr.msk.f32.mxu0 %vm1831_vm0, %v1830_v0 }
 0x3b2   : > { %1748 = vmatmul.mubr.msk.f32.vlgmr.msra.gmra.mrb[14].mxu0 %vm264_vm2, %v1805_v32 }
 0x3d3   : > { %v273_v33 = vpop.xlane.xlu1 %272 }
 0x3d4   : > { %1806 = vrcp.f32 %v273_v33 }
 0x3de   : > { %v1807_v34 = vpop.eup %1806 }
 0x3df   : > { %v351_v35 = vmul.f32 %v1807_v34, %v1977_v30 }
 0x3e1   : > { %352 = vst.msk [vmem:[%s2007_s23] sm:$0xff] %vm189_vm1, %v351_v35 }
 0x403   : > { %v439_v36 = vpop.xlane.xlu0 %438 }
 0x404   : > { %1808 = vrcp.f32 %v439_v36 }
 0x407   : > { %v610_v37 = vpop.xlane.xlu1 %609 }
 0x408   : > { %1810 = vrcp.f32 %v610_v37 }
 0x40b   : > { %v781_v38 = vpop.xlane.xlu1 %780 }
 0x40c   : > { %1812 = vrcp.f32 %v781_v38 }
 0x40e   : > { %v1809_v40 = vpop.eup %1808 }
 0x40f   : > { %v952_v39 = vpop.xlane.xlu1 %951 }
 0x410   : > { %1814 = vrcp.f32 %v952_v39 }
 0x412   : > { %v1811_v43 = vpop.eup %1810 }
 0x416   : > { %v1813_v46 = vpop.eup %1812 }
 0x41a   : > { %v1815_v50 = vpop.eup %1814 }
 0x438   : > { %v1123_v55 = vpop.xlane.xlu1 %1122 }
 0x439   : > { %1816 = vrcp.f32 %v1123_v55 }
 0x43c   : > { %v1294_v56 = vpop.xlane.xlu1 %1293 }
 0x43d   : > { %1818 = vrcp.f32 %v1294_v56 }
 0x443   : > { %v1817_v57 = vpop.eup %1816 }
 0x447   : > { %v1819_v61 = vpop.eup %1818 }
 0x448   : > { %v513_v41 = vpop.f32.mrb[2].mxu0 }
 0x449   : > { %v517_v0 = vmul.f32 %v1809_v40, %v513_v41  ;;  %v1689_v42 = vpop.f32.mrb[3].mxu0 }
 0x44b   : > { %519 = vrot.lane.b32.xlu0 %v517_v0, %s1855_s13 }
 0x44c   : > { %v684_v44 = vpop.f32.mrb[4].mxu0 }
 0x44d   : > { %v688_v45 = vmul.f32 %v1811_v43, %v684_v44  ;;  %v1699_v30 = vpop.f32.mrb[5].mxu0 }
 0x44f   : > { %690 = vrot.lane.b32.xlu1 %v688_v45, %s1856_s14 }
 0x450   : > { %v855_v47 = vpop.f32.mrb[6].mxu0 }
 0x451   : > { %v859_v48 = vmul.f32 %v1813_v46, %v855_v47  ;;  %v1709_v49 = vpop.f32.mrb[7].mxu0 }
 0x453   : > { %861 = vrot.lane.b32.xlu1 %v859_v48, %s1857_s24 }
 0x454   : > { %v1026_v51 = vpop.f32.mrb[8].mxu0 }
 0x455   : > { %v1030_v52 = vmul.f32 %v1815_v50, %v1026_v51  ;;  %v1719_v53 = vpop.f32.mrb[9].mxu0 }
 0x457   : > { %1032 = vrot.lane.b32.xlu1 %v1030_v52, %s1858_s25 }
 0x46a   : > { %1464 = vadd.xlane.f32.xlu0 %v1463_v54 }
 0x47d   : > { %v1197_v58 = vpop.f32.mrb[10].mxu0 }
 0x47e   : > { %v1201_v59 = vmul.f32 %v1817_v57, %v1197_v58  ;;  %v1729_v60 = vpop.f32.mrb[11].mxu0 }
 0x480   : > { %1203 = vrot.lane.b32.xlu1 %v1201_v59, %s1859_s26 }
 0x481   : > { %v1368_v62 = vpop.f32.mrb[12].mxu0 }
 0x482   : > { %v1372_v63 = vmul.f32 %v1819_v61, %v1368_v62  ;;  %v1739_v1 = vpop.f32.mrb[13].mxu0 }
 0x484   : > { %1374 = vrot.lane.b32.xlu0 %v1372_v63, %s1860_s27 }
 0x485   : > { %v1539_v2 = vpop.f32.mrb[14].mxu0 }
 0x486   : > { %v1749_v3 = vpop.f32.mrb[15].mxu0 }
 0x4bd   : > { %v520_v4 = vpop.permute.xlu0 %519 }
 0x4be   : > { %523 = vst.msk [vmem:[%s2007_s23] sm:$0xff] %vm522_vm4, %v520_v4 }
 0x4c1   : > { %v691_v5 = vpop.permute.xlu1 %690 }
 0x4c2   : > { %694 = vst.msk [vmem:[%s2007_s23] sm:$0xff] %vm693_vm5, %v691_v5 }
 0x4c5   : > { %v862_v6 = vpop.permute.xlu1 %861 }
 0x4c6   : > { %865 = vst.msk [vmem:[%s2007_s23] sm:$0xff] %vm864_vm6, %v862_v6 }
 0x4c9   : > { %v1033_v7 = vpop.permute.xlu1 %1032 }
 0x4ca   : > { %1036 = vst.msk [vmem:[%s2007_s23] sm:$0xff] %vm1035_vm7, %v1033_v7 }
 0x4f2   : > { %v1204_v8 = vpop.permute.xlu1 %1203 }
 0x4f3   : > { %1207 = vst.msk [vmem:[%s2007_s23] sm:$0xff] %vm1206_vm8, %v1204_v8 }
 0x4f7   : > { %v1465_v9 = vpop.xlane.xlu0 %1464 }
 0x4f8   : > { %1820 = vrcp.f32 %v1465_v9 }
 0x4fb   : > { %v1375_v10 = vpop.permute.xlu0 %1374 }
 0x4fc   : > { %1378 = vst.msk [vmem:[%s2007_s23] sm:$0xff] %vm1377_vm9, %v1375_v10 }
 0x502   : > { %v1821_v11 = vpop.eup %1820 }
 0x503   : > { %v1543_v12 = vmul.f32 %v1821_v11, %v1539_v2 }
 0x505   : > { %1545 = vrot.lane.b32.xlu1 %v1543_v12, %s1861_s28 }
 0x577   : > { %v1546_v13 = vpop.permute.xlu1 %1545 }
 0x578   : > { %1549 = vst.msk [vmem:[%s2007_s23] sm:$0xff] %vm1548_vm10, %v1546_v13 }
 0x579 PF: > { %s13_s12 = sadd.s32 1, %s1828_s12  }
 0x57a   : > { %p10_p4 = scmp.ge.s32.totalorder %s13_s12, 10  }
 0x57c   :  { %12 = sbr.rel (!%p10_p4) target bundleno = 1 (0x1), region = 62 }

</bundles_post_ra>
